<compile_context>
chip_gen: v6e
topology: v6e:2x2x1
jax: 0.10.0
libtpu: 0.0.40
codegen_flags: <defaults>
</compile_context>

<pallas_src>
import functools

import jax
import jax.numpy as jnp
from jax import lax
from jax.experimental import pallas as pl
from jax.experimental.pallas import tpu as pltpu


def _asym_fusion_kernel(H, W, TH,
                        cid_ref, xh_ref, xl_ref,
                        w_plus_ref, b_plus_ref,
                        w_pa1_ref, b_pa1_ref, w_pa2_ref, b_pa2_ref,
                        w_end_ref, b_end_ref,
                        out_ref, gap_ref,
                        im2col_ref):
    t = pl.program_id(1)
    TN = TH * W                      # interior pixels of this tile
    halo = W + 1                     # flattened halo on each side of the slab
    Cl = xl_ref.shape[-1]
    SLAB = xl_ref.shape[-2]

    xh = xh_ref[0, 0]                # (SLAB, Ch)  bf16
    xl = xl_ref[0, 0]                # (SLAB, Cl)  bf16

    # ---- plus_conv: 1x1 conv (+folded BN) + ReLU over the whole halo slab ----
    h = jnp.dot(xh, w_plus_ref[...], preferred_element_type=jnp.float32)
    h = jnp.maximum(h + b_plus_ref[...], 0.0)               # (SLAB, Cl) f32

    # Zero h where the slab row is halo padding (outside the real image), so
    # feat == 0 there; this replaces all per-tap row-boundary masks.
    j = lax.broadcasted_iota(jnp.int32, (SLAB, 1), 0)
    g = t * TN + j                                          # padded-flat index
    h = jnp.where((g >= halo) & (g < halo + H * W), h, 0.0)

    feat = (xl.astype(jnp.float32) + h).astype(jnp.bfloat16)  # (SLAB, Cl)

    # ---- channel-attention GAP: per-tile partial sum (finalized in wrapper) --
    gap_ref[0, 0] = jnp.sum(h[halo:halo + TN], axis=0, keepdims=True)

    # ---- pixel attention on this tile's x_low ----
    xl_int = xl[halo:halo + TN]                              # (TN, Cl) bf16
    p = jnp.dot(xl_int, w_pa1_ref[...], preferred_element_type=jnp.float32)
    p = jnp.maximum(p + b_pa1_ref[...], 0.0).astype(jnp.bfloat16)
    p = jnp.dot(p, w_pa2_ref[...], preferred_element_type=jnp.float32)
    pa = jax.nn.sigmoid(p + b_pa2_ref[...])                  # (TN, Cl) f32

    # ---- 3x3 end_conv as ONE im2col matmul (K = 9*Cl) ----
    cid = cid_ref[...]                                       # (TN, 1) int32 col
    ok_m1 = cid > 0                                          # dx = -1 valid
    ok_p1 = cid < (W - 1)                                    # dx = +1 valid
    for dy in (-1, 0, 1):
        for dx in (-1, 0, 1):
            k = (dy + 1) * 3 + (dx + 1)
            s = dy * W + dx
            tap = feat[halo + s: halo + s + TN]              # (TN, Cl) bf16
            if dx == -1:
                tap = jnp.where(ok_m1, tap, 0)
            elif dx == 1:
                tap = jnp.where(ok_p1, tap, 0)
            im2col_ref[:, k * Cl:(k + 1) * Cl] = tap
    acc = jnp.dot(im2col_ref[...], w_end_ref[...],
                  preferred_element_type=jnp.float32)        # (TN, Co) f32

    # bias (BN folded) added once, ReLU and pixel attention fused in one pass.
    out_ref[0, 0] = (jnp.maximum(acc + b_end_ref[...], 0.0) * pa
                     ).astype(out_ref.dtype)


def asym_fusion_pallas(x_high, x_low, params, tile_rows=None):
    B, H, W, Ch = x_high.shape
    Bl, Hl, Wl, Cl = x_low.shape
    assert (B, H, W) == (Bl, Hl, Wl)
    Co = params["b_end"].shape[-1]
    assert Co == Cl, "planes_out must equal planes_low (feat * pa broadcast)"
    N = H * W

    # --- spatial row-tile selection (bounds VMEM; halve for v7x if needed) ---
    if tile_rows is None:
        tile_rows = 1
        for cand in range(H, 0, -1):
            if H % cand == 0 and cand * W <= 2048:
                tile_rows = cand
                break
    assert H % tile_rows == 0
    TH = tile_rows
    T = H // TH
    TN = TH * W
    halo = W + 1
    SLAB = TN + 2 * halo
    SLAB_PAD = ((SLAB + 7) // 8) * 8
    L = (T - 1) * TN + SLAB_PAD      # padded flattened length

    def make_slabs(x):  # (B,H,W,C) -> (B,T,SLAB_PAD,C) bf16, zero-padded halo
        C = x.shape[-1]
        xf = x.reshape(B, N, C)
        xp = jnp.pad(xf, ((0, 0), (halo, L - halo - N), (0, 0)))
        sl = jnp.stack([xp[:, t * TN:t * TN + SLAB_PAD] for t in range(T)],
                       axis=1)
        return sl.astype(jnp.bfloat16)

    xh_sl = make_slabs(x_high)                      # (B,T,SLAB_PAD,Ch)
    xl_sl = make_slabs(x_low)                       # (B,T,SLAB_PAD,Cl)
    cid = (jnp.arange(TN, dtype=jnp.int32) % W).reshape(TN, 1)

    bf = lambda a: a.astype(jnp.bfloat16)
    f32 = lambda a: a.astype(jnp.float32)
    weights = [bf(params["w_plus"]), f32(params["b_plus"]),
               bf(params["w_pa1"]), f32(params["b_pa1"]),
               bf(params["w_pa2"]), f32(params["b_pa2"]),
               bf(params["w_end"].reshape(9 * Cl, Co)), f32(params["b_end"])]

    def const_spec(a):
        return pl.BlockSpec(a.shape, lambda b, t, _r=a.ndim: (0,) * _r)

    in_specs = ([const_spec(cid),
                 pl.BlockSpec((1, 1, SLAB_PAD, Ch), lambda b, t: (b, t, 0, 0)),
                 pl.BlockSpec((1, 1, SLAB_PAD, Cl), lambda b, t: (b, t, 0, 0))]
                + [const_spec(w) for w in weights])

    out_shapes = (jax.ShapeDtypeStruct((B, T, TN, Co), jnp.float32),
                  jax.ShapeDtypeStruct((B, T, 1, Cl), jnp.float32))
    out_specs = (pl.BlockSpec((1, 1, TN, Co), lambda b, t: (b, t, 0, 0)),
                 pl.BlockSpec((1, 1, 1, Cl), lambda b, t: (b, t, 0, 0)))

    out_main, gap_part = pl.pallas_call(
        functools.partial(_asym_fusion_kernel, H, W, TH),
        out_shape=out_shapes,
        grid=(B, T),
        in_specs=in_specs,
        out_specs=out_specs,
        scratch_shapes=[pltpu.VMEM((TN, 9 * Cl), jnp.bfloat16)],
        compiler_params=pltpu.CompilerParams(
            dimension_semantics=("parallel", "parallel"),
            vmem_limit_bytes=48 * 1024 * 1024),
    )(cid, xh_sl, xl_sl, *weights)

    # ---- tiny XLA epilogue: finalize global GAP -> channel attention ----
    gap = jnp.sum(gap_part[:, :, 0, :], axis=1) / float(N)       # (B, Cl)
    c = jnp.maximum(gap @ params["w_ca1"] + params["b_ca1"], 0.0)
    ca = jax.nn.sigmoid(c @ params["w_ca2"] + params["b_ca2"])    # (B, Cl)
    out = out_main.reshape(B, H, W, Co) * ca[:, None, None, :]
    return out


def init_params(key, planes_high, planes_low, planes_out):
    """Deterministic synthetic parameters; Conv+BN pairs folded (eval-mode BN)."""
    cl4 = planes_low // 4
    keys = iter(jax.random.split(key, 64))

    def uconv(cin, cout, k=1):
        fan_in = cin * k * k
        bound = 1.0 / (fan_in ** 0.5)
        shape = (cin, cout) if k == 1 else (k, k, cin, cout)
        w = jax.random.uniform(next(keys), shape, jnp.float32, -bound, bound)
        b = jax.random.uniform(next(keys), (cout,), jnp.float32, -bound, bound)
        return w, b

    def ubn(c):
        gamma = 1.0 + 0.1 * jax.random.normal(next(keys), (c,), jnp.float32)
        beta = 0.1 * jax.random.normal(next(keys), (c,), jnp.float32)
        mean = 0.1 * jax.random.normal(next(keys), (c,), jnp.float32)
        var = 1.0 + 0.1 * jnp.abs(jax.random.normal(next(keys), (c,), jnp.float32))
        return gamma, beta, mean, var

    def fold(w, b, bn):
        gamma, beta, mean, var = bn
        scale = gamma / jnp.sqrt(var + 1e-5)        # per output channel
        return w * scale, ((b - mean) * scale + beta)[None, :]

    p = {}
    w, b = uconv(planes_high, planes_low)
    p["w_plus"], p["b_plus"] = fold(w, b, ubn(planes_low))

    w, b = uconv(planes_low, cl4)
    p["w_pa1"], p["b_pa1"] = fold(w, b, ubn(cl4))
    w, b = uconv(cl4, planes_low)
    p["w_pa2"], p["b_pa2"] = fold(w, b, ubn(planes_low))

    w, b = uconv(planes_low, cl4)
    p["w_ca1"], p["b_ca1"] = fold(w, b, ubn(cl4))
    w, b = uconv(cl4, planes_low)
    p["w_ca2"], p["b_ca2"] = fold(w, b, ubn(planes_low))

    w, b = uconv(planes_low, planes_out, k=3)
    p["w_end"], p["b_end"] = fold(w, b, ubn(planes_out))          # (3,3,Cl,Co)
    return p


def asym_fusion_ref(x_high, x_low, params):
    """Pure-JAX f32 reference (independent conv path) for correctness checking."""
    def conv1x1(x, w, b):
        return jnp.einsum("bhwc,cd->bhwd", x, w) + b

    h = jax.nn.relu(conv1x1(x_high, params["w_plus"], params["b_plus"]))
    pa = jax.nn.sigmoid(conv1x1(
        jax.nn.relu(conv1x1(x_low, params["w_pa1"], params["b_pa1"])),
        params["w_pa2"], params["b_pa2"]))
    g = jnp.mean(h, axis=(1, 2), keepdims=True)
    ca = jax.nn.sigmoid(conv1x1(
        jax.nn.relu(conv1x1(g, params["w_ca1"], params["b_ca1"])),
        params["w_ca2"], params["b_ca2"]))
    feat = x_low + h
    conv = lax.conv_general_dilated(
        feat, params["w_end"], (1, 1), "SAME",
        dimension_numbers=("NHWC", "HWIO", "NHWC"))
    feat = jax.nn.relu(conv + params["b_end"])
    return feat * ca * pa


if __name__ == "__main__":
    key = jax.random.PRNGKey(0)
    # planes_out == planes_low so that `feat * pa` broadcasts (as in PyTorch).
    planes_high, planes_low, planes_out = 8, 16, 16
    B, H, W = 2, 8, 8

    kp, khi, klo = jax.random.split(key, 3)
    params = init_params(kp, planes_high, planes_low, planes_out)
    x_high = jax.random.normal(khi, (B, H, W, planes_high), jnp.float32)
    x_low = jax.random.normal(klo, (B, H, W, planes_low), jnp.float32)

    # tile_rows=4 -> 2 spatial tiles per image: exercises halo + cross-tile GAP.
    out = asym_fusion_pallas(x_high, x_low, params, tile_rows=4)
    out = jax.block_until_ready(out)

    ref = asym_fusion_ref(x_high, x_low, params)
    assert out.shape == (B, H, W, planes_out)
    max_err = float(jnp.max(jnp.abs(out - ref)))
    # bf16 MXU operands with f32 accumulation -> relaxed tolerance vs f32 ref.
    assert jnp.allclose(out, ref, rtol=5e-2, atol=5e-2), f"max abs err {max_err}"
    print("KERNEL_OK")
</pallas_src>

<mosaic_0001>
module attributes {stable_mosaic.version = 11 : i64} {
  func.func @_asym_fusion_kernel(%arg0: i32, %arg1: i32, %arg2: memref<32x1xi32, #tpu.memory_space<vmem>>, %arg3: memref<1x1x56x8xbf16, #tpu.memory_space<vmem>>, %arg4: memref<1x1x56x16xbf16, #tpu.memory_space<vmem>>, %arg5: memref<8x16xbf16, #tpu.memory_space<vmem>>, %arg6: memref<1x16xf32, #tpu.memory_space<vmem>>, %arg7: memref<16x4xbf16, #tpu.memory_space<vmem>>, %arg8: memref<1x4xf32, #tpu.memory_space<vmem>>, %arg9: memref<4x16xbf16, #tpu.memory_space<vmem>>, %arg10: memref<1x16xf32, #tpu.memory_space<vmem>>, %arg11: memref<144x16xbf16, #tpu.memory_space<vmem>>, %arg12: memref<1x16xf32, #tpu.memory_space<vmem>>, %arg13: memref<1x1x32x16xf32, #tpu.memory_space<vmem>>, %arg14: memref<1x1x1x16xf32, #tpu.memory_space<vmem>>, %arg15: memref<32x144xbf16, #tpu.memory_space<vmem>>) attributes {dimension_semantics = [#tpu.dimension_semantics<parallel>, #tpu.dimension_semantics<parallel>], iteration_bounds = array<i64: 2, 2>, scalar_prefetch = 0 : i64, scratch_operands = 1 : i64, tpu.core_type = #tpu.core_type<tc>, window_params = [{pipeline_mode = #tpu.pipeline_mode<synchronous>, transform_indices = @transform_0, window_bounds = array<i64: 32, 1>}, {transform_indices = @transform_1, window_bounds = array<i64: 1, 1, 56, 8>}, {transform_indices = @transform_2, window_bounds = array<i64: 1, 1, 56, 16>}, {pipeline_mode = #tpu.pipeline_mode<synchronous>, transform_indices = @transform_3, window_bounds = array<i64: 8, 16>}, {pipeline_mode = #tpu.pipeline_mode<synchronous>, transform_indices = @transform_4, window_bounds = array<i64: 1, 16>}, {pipeline_mode = #tpu.pipeline_mode<synchronous>, transform_indices = @transform_5, window_bounds = array<i64: 16, 4>}, {pipeline_mode = #tpu.pipeline_mode<synchronous>, transform_indices = @transform_6, window_bounds = array<i64: 1, 4>}, {pipeline_mode = #tpu.pipeline_mode<synchronous>, transform_indices = @transform_7, window_bounds = array<i64: 4, 16>}, {pipeline_mode = #tpu.pipeline_mode<synchronous>, transform_indices = @transform_8, window_bounds = array<i64: 1, 16>}, {pipeline_mode = #tpu.pipeline_mode<synchronous>, transform_indices = @transform_9, window_bounds = array<i64: 144, 16>}, {pipeline_mode = #tpu.pipeline_mode<synchronous>, transform_indices = @transform_10, window_bounds = array<i64: 1, 16>}, {transform_indices = @transform_11, window_bounds = array<i64: 1, 1, 32, 16>}, {transform_indices = @transform_12, window_bounds = array<i64: 1, 1, 1, 16>}]} {
    %c0 = arith.constant 0 : index
    %c0_0 = arith.constant 0 : index
    %c0_1 = arith.constant 0 : index
    %c0_2 = arith.constant 0 : index
    %0 = vector.load %arg3[%c0, %c0_0, %c0_1, %c0_2] : memref<1x1x56x8xbf16, #tpu.memory_space<vmem>>, vector<1x1x56x8xbf16>
    %1 = vector.shape_cast %0 : vector<1x1x56x8xbf16> to vector<56x8xbf16>
    %c0_3 = arith.constant 0 : index
    %c0_4 = arith.constant 0 : index
    %c0_5 = arith.constant 0 : index
    %c0_6 = arith.constant 0 : index
    %2 = vector.load %arg4[%c0_3, %c0_4, %c0_5, %c0_6] : memref<1x1x56x16xbf16, #tpu.memory_space<vmem>>, vector<1x1x56x16xbf16>
    %3 = vector.shape_cast %2 : vector<1x1x56x16xbf16> to vector<56x16xbf16>
    %c0_7 = arith.constant 0 : index
    %c0_8 = arith.constant 0 : index
    %4 = vector.load %arg5[%c0_7, %c0_8] : memref<8x16xbf16, #tpu.memory_space<vmem>>, vector<8x16xbf16>
    %cst = arith.constant dense<0.000000e+00> : vector<56x16xf32>
    %5 = tpu.matmul %1, %4, %cst {dimension_numbers = #tpu.dot_dimension_numbers<[1], [0], [0], [1], [0, 0, 1, 1], [], []>} : vector<56x8xbf16>, vector<8x16xbf16>, vector<56x16xf32> -> vector<56x16xf32>
    %c0_9 = arith.constant 0 : index
    %c0_10 = arith.constant 0 : index
    %6 = vector.load %arg6[%c0_9, %c0_10] : memref<1x16xf32, #tpu.memory_space<vmem>>, vector<1x16xf32>
    %7 = vector.broadcast %6 : vector<1x16xf32> to vector<56x16xf32>
    %8 = arith.addf %5, %7 : vector<56x16xf32>
    %cst_11 = arith.constant 0.000000e+00 : f32
    %9 = vector.broadcast %cst_11 : f32 to vector<56x16xf32>
    %10 = arith.maximumf %8, %9 : vector<56x16xf32>
    %11 = tpu.iota {dimensions = array<i32: 0>} : vector<56x1xi32>
    %c32_i32 = arith.constant 32 : i32
    %12 = arith.muli %arg1, %c32_i32 : i32
    %13 = vector.broadcast %12 : i32 to vector<56x1xi32>
    %14 = arith.addi %13, %11 : vector<56x1xi32>
    %c9_i32 = arith.constant 9 : i32
    %15 = vector.broadcast %c9_i32 : i32 to vector<56x1xi32>
    %16 = arith.cmpi sge, %14, %15 : vector<56x1xi32>
    %c73_i32 = arith.constant 73 : i32
    %17 = vector.broadcast %c73_i32 : i32 to vector<56x1xi32>
    %18 = arith.cmpi slt, %14, %17 : vector<56x1xi32>
    %19 = arith.andi %16, %18 : vector<56x1xi1>
    %cst_12 = arith.constant 0.000000e+00 : f32
    %20 = vector.shape_cast %19 : vector<56x1xi1> to vector<56x1xi1>
    %21 = vector.broadcast %20 : vector<56x1xi1> to vector<56x16xi1>
    %22 = vector.broadcast %cst_12 : f32 to vector<56x16xf32>
    %23 = arith.select %21, %10, %22 : vector<56x16xi1>, vector<56x16xf32>
    %24 = arith.extf %3 : vector<56x16xbf16> to vector<56x16xf32>
    %25 = arith.addf %24, %23 : vector<56x16xf32>
    %26 = arith.truncf %25 : vector<56x16xf32> to vector<56x16xbf16>
    %27 = vector.extract_strided_slice %23 {offsets = [9, 0], sizes = [32, 16], strides = [1, 1]} : vector<56x16xf32> to vector<32x16xf32>
    %cst_13 = arith.constant dense<0.000000e+00> : vector<16xf32>
    %28 = vector.multi_reduction <add>, %27, %cst_13 [0] : vector<32x16xf32> to vector<16xf32>
    %29 = vector.shape_cast %28 : vector<16xf32> to vector<1x16xf32>
    %c0_14 = arith.constant 0 : index
    %c0_15 = arith.constant 0 : index
    %c0_16 = arith.constant 0 : index
    %c0_17 = arith.constant 0 : index
    %30 = vector.load %arg14[%c0_14, %c0_15, %c0_16, %c0_17] : memref<1x1x1x16xf32, #tpu.memory_space<vmem>>, vector<1x1x1x16xf32>
    %31 = vector.shape_cast %30 : vector<1x1x1x16xf32> to vector<1x16xf32>
    %32 = vector.shape_cast %29 : vector<1x16xf32> to vector<1x1x1x16xf32>
    tpu.vector_store %arg14[%c0_14, %c0_15, %c0_16, %c0_17], %32 {strides = array<i32>} : memref<1x1x1x16xf32, #tpu.memory_space<vmem>>, vector<1x1x1x16xf32>,
    %33 = vector.extract_strided_slice %3 {offsets = [9, 0], sizes = [32, 16], strides = [1, 1]} : vector<56x16xbf16> to vector<32x16xbf16>
    %c0_18 = arith.constant 0 : index
    %c0_19 = arith.constant 0 : index
    %34 = vector.load %arg7[%c0_18, %c0_19] : memref<16x4xbf16, #tpu.memory_space<vmem>>, vector<16x4xbf16>
    %cst_20 = arith.constant dense<0.000000e+00> : vector<32x4xf32>
    %35 = tpu.matmul %33, %34, %cst_20 {dimension_numbers = #tpu.dot_dimension_numbers<[1], [0], [0], [1], [0, 0, 1, 1], [], []>} : vector<32x16xbf16>, vector<16x4xbf16>, vector<32x4xf32> -> vector<32x4xf32>
    %c0_21 = arith.constant 0 : index
    %c0_22 = arith.constant 0 : index
    %36 = vector.load %arg8[%c0_21, %c0_22] : memref<1x4xf32, #tpu.memory_space<vmem>>, vector<1x4xf32>
    %37 = vector.broadcast %36 : vector<1x4xf32> to vector<32x4xf32>
    %38 = arith.addf %35, %37 : vector<32x4xf32>
    %cst_23 = arith.constant 0.000000e+00 : f32
    %39 = vector.broadcast %cst_23 : f32 to vector<32x4xf32>
    %40 = arith.maximumf %38, %39 : vector<32x4xf32>
    %41 = arith.truncf %40 : vector<32x4xf32> to vector<32x4xbf16>
    %c0_24 = arith.constant 0 : index
    %c0_25 = arith.constant 0 : index
    %42 = vector.load %arg9[%c0_24, %c0_25] : memref<4x16xbf16, #tpu.memory_space<vmem>>, vector<4x16xbf16>
    %cst_26 = arith.constant dense<0.000000e+00> : vector<32x16xf32>
    %43 = tpu.matmul %41, %42, %cst_26 {dimension_numbers = #tpu.dot_dimension_numbers<[1], [0], [0], [1], [0, 0, 1, 1], [], []>} : vector<32x4xbf16>, vector<4x16xbf16>, vector<32x16xf32> -> vector<32x16xf32>
    %c0_27 = arith.constant 0 : index
    %c0_28 = arith.constant 0 : index
    %44 = vector.load %arg10[%c0_27, %c0_28] : memref<1x16xf32, #tpu.memory_space<vmem>>, vector<1x16xf32>
    %45 = vector.broadcast %44 : vector<1x16xf32> to vector<32x16xf32>
    %46 = arith.addf %43, %45 : vector<32x16xf32>
    %47 = arith.negf %46 : vector<32x16xf32>
    %48 = math.exp %47 : vector<32x16xf32>
    %cst_29 = arith.constant 1.000000e+00 : f32
    %49 = vector.broadcast %cst_29 : f32 to vector<32x16xf32>
    %50 = arith.addf %49, %48 : vector<32x16xf32>
    %51 = arith.divf %49, %50 : vector<32x16xf32>
    %c0_30 = arith.constant 0 : index
    %c0_31 = arith.constant 0 : index
    %52 = vector.load %arg2[%c0_30, %c0_31] : memref<32x1xi32, #tpu.memory_space<vmem>>, vector<32x1xi32>
    %c0_i32 = arith.constant 0 : i32
    %53 = vector.broadcast %c0_i32 : i32 to vector<32x1xi32>
    %54 = arith.cmpi sgt, %52, %53 : vector<32x1xi32>
    %c7_i32 = arith.constant 7 : i32
    %55 = vector.broadcast %c7_i32 : i32 to vector<32x1xi32>
    %56 = arith.cmpi slt, %52, %55 : vector<32x1xi32>
    %57 = vector.extract_strided_slice %26 {offsets = [0, 0], sizes = [32, 16], strides = [1, 1]} : vector<56x16xbf16> to vector<32x16xbf16>
    %c0_i32_32 = arith.constant 0 : i32
    %58 = arith.sitofp %c0_i32_32 : i32 to bf16
    %59 = vector.shape_cast %54 : vector<32x1xi1> to vector<32x1xi1>
    %60 = vector.broadcast %59 : vector<32x1xi1> to vector<32x16xi1>
    %61 = vector.broadcast %58 : bf16 to vector<32x16xbf16>
    %62 = arith.select %60, %57, %61 : vector<32x16xi1>, vector<32x16xbf16>
    %c0_33 = arith.constant 0 : index
    %c0_34 = arith.constant 0 : index
    %63 = vector.load %arg15[%c0_33, %c0_34] : memref<32x144xbf16, #tpu.memory_space<vmem>>, vector<32x16xbf16>
    tpu.vector_store %arg15[%c0_33, %c0_34], %62 {strides = array<i32>} : memref<32x144xbf16, #tpu.memory_space<vmem>>, vector<32x16xbf16>,
    %64 = vector.extract_strided_slice %26 {offsets = [1, 0], sizes = [32, 16], strides = [1, 1]} : vector<56x16xbf16> to vector<32x16xbf16>
    %c0_35 = arith.constant 0 : index
    %c16 = arith.constant 16 : index
    %65 = vector.load %arg15[%c0_35, %c16] : memref<32x144xbf16, #tpu.memory_space<vmem>>, vector<32x16xbf16>
    tpu.vector_store %arg15[%c0_35, %c16], %64 {strides = array<i32>} : memref<32x144xbf16, #tpu.memory_space<vmem>>, vector<32x16xbf16>,
    %66 = vector.extract_strided_slice %26 {offsets = [2, 0], sizes = [32, 16], strides = [1, 1]} : vector<56x16xbf16> to vector<32x16xbf16>
    %c0_i32_36 = arith.constant 0 : i32
    %67 = arith.sitofp %c0_i32_36 : i32 to bf16
    %68 = vector.shape_cast %56 : vector<32x1xi1> to vector<32x1xi1>
    %69 = vector.broadcast %68 : vector<32x1xi1> to vector<32x16xi1>
    %70 = vector.broadcast %67 : bf16 to vector<32x16xbf16>
    %71 = arith.select %69, %66, %70 : vector<32x16xi1>, vector<32x16xbf16>
    %c0_37 = arith.constant 0 : index
    %c32 = arith.constant 32 : index
    %72 = vector.load %arg15[%c0_37, %c32] : memref<32x144xbf16, #tpu.memory_space<vmem>>, vector<32x16xbf16>
    tpu.vector_store %arg15[%c0_37, %c32], %71 {strides = array<i32>} : memref<32x144xbf16, #tpu.memory_space<vmem>>, vector<32x16xbf16>,
    %73 = vector.extract_strided_slice %26 {offsets = [8, 0], sizes = [32, 16], strides = [1, 1]} : vector<56x16xbf16> to vector<32x16xbf16>
    %c0_i32_38 = arith.constant 0 : i32
    %74 = arith.sitofp %c0_i32_38 : i32 to bf16
    %75 = vector.shape_cast %54 : vector<32x1xi1> to vector<32x1xi1>
    %76 = vector.broadcast %75 : vector<32x1xi1> to vector<32x16xi1>
    %77 = vector.broadcast %74 : bf16 to vector<32x16xbf16>
    %78 = arith.select %76, %73, %77 : vector<32x16xi1>, vector<32x16xbf16>
    %c0_39 = arith.constant 0 : index
    %c48 = arith.constant 48 : index
    %79 = vector.load %arg15[%c0_39, %c48] : memref<32x144xbf16, #tpu.memory_space<vmem>>, vector<32x16xbf16>
    tpu.vector_store %arg15[%c0_39, %c48], %78 {strides = array<i32>} : memref<32x144xbf16, #tpu.memory_space<vmem>>, vector<32x16xbf16>,
    %80 = vector.extract_strided_slice %26 {offsets = [9, 0], sizes = [32, 16], strides = [1, 1]} : vector<56x16xbf16> to vector<32x16xbf16>
    %c0_40 = arith.constant 0 : index
    %c64 = arith.constant 64 : index
    %81 = vector.load %arg15[%c0_40, %c64] : memref<32x144xbf16, #tpu.memory_space<vmem>>, vector<32x16xbf16>
    tpu.vector_store %arg15[%c0_40, %c64], %80 {strides = array<i32>} : memref<32x144xbf16, #tpu.memory_space<vmem>>, vector<32x16xbf16>,
    %82 = vector.extract_strided_slice %26 {offsets = [10, 0], sizes = [32, 16], strides = [1, 1]} : vector<56x16xbf16> to vector<32x16xbf16>
    %c0_i32_41 = arith.constant 0 : i32
    %83 = arith.sitofp %c0_i32_41 : i32 to bf16
    %84 = vector.shape_cast %56 : vector<32x1xi1> to vector<32x1xi1>
    %85 = vector.broadcast %84 : vector<32x1xi1> to vector<32x16xi1>
    %86 = vector.broadcast %83 : bf16 to vector<32x16xbf16>
    %87 = arith.select %85, %82, %86 : vector<32x16xi1>, vector<32x16xbf16>
    %c0_42 = arith.constant 0 : index
    %c80 = arith.constant 80 : index
    %88 = vector.load %arg15[%c0_42, %c80] : memref<32x144xbf16, #tpu.memory_space<vmem>>, vector<32x16xbf16>
    tpu.vector_store %arg15[%c0_42, %c80], %87 {strides = array<i32>} : memref<32x144xbf16, #tpu.memory_space<vmem>>, vector<32x16xbf16>,
    %89 = vector.extract_strided_slice %26 {offsets = [16, 0], sizes = [32, 16], strides = [1, 1]} : vector<56x16xbf16> to vector<32x16xbf16>
    %c0_i32_43 = arith.constant 0 : i32
    %90 = arith.sitofp %c0_i32_43 : i32 to bf16
    %91 = vector.shape_cast %54 : vector<32x1xi1> to vector<32x1xi1>
    %92 = vector.broadcast %91 : vector<32x1xi1> to vector<32x16xi1>
    %93 = vector.broadcast %90 : bf16 to vector<32x16xbf16>
    %94 = arith.select %92, %89, %93 : vector<32x16xi1>, vector<32x16xbf16>
    %c0_44 = arith.constant 0 : index
    %c96 = arith.constant 96 : index
    %95 = vector.load %arg15[%c0_44, %c96] : memref<32x144xbf16, #tpu.memory_space<vmem>>, vector<32x16xbf16>
    tpu.vector_store %arg15[%c0_44, %c96], %94 {strides = array<i32>} : memref<32x144xbf16, #tpu.memory_space<vmem>>, vector<32x16xbf16>,
    %96 = vector.extract_strided_slice %26 {offsets = [17, 0], sizes = [32, 16], strides = [1, 1]} : vector<56x16xbf16> to vector<32x16xbf16>
    %c0_45 = arith.constant 0 : index
    %c112 = arith.constant 112 : index
    %97 = vector.load %arg15[%c0_45, %c112] : memref<32x144xbf16, #tpu.memory_space<vmem>>, vector<32x16xbf16>
    tpu.vector_store %arg15[%c0_45, %c112], %96 {strides = array<i32>} : memref<32x144xbf16, #tpu.memory_space<vmem>>, vector<32x16xbf16>,
    %98 = vector.extract_strided_slice %26 {offsets = [18, 0], sizes = [32, 16], strides = [1, 1]} : vector<56x16xbf16> to vector<32x16xbf16>
    %c0_i32_46 = arith.constant 0 : i32
    %99 = arith.sitofp %c0_i32_46 : i32 to bf16
    %100 = vector.shape_cast %56 : vector<32x1xi1> to vector<32x1xi1>
    %101 = vector.broadcast %100 : vector<32x1xi1> to vector<32x16xi1>
    %102 = vector.broadcast %99 : bf16 to vector<32x16xbf16>
    %103 = arith.select %101, %98, %102 : vector<32x16xi1>, vector<32x16xbf16>
    %c0_47 = arith.constant 0 : index
    %c128 = arith.constant 128 : index
    %104 = vector.load %arg15[%c0_47, %c128] : memref<32x144xbf16, #tpu.memory_space<vmem>>, vector<32x16xbf16>
    tpu.vector_store %arg15[%c0_47, %c128], %103 {strides = array<i32>} : memref<32x144xbf16, #tpu.memory_space<vmem>>, vector<32x16xbf16>,
    %c0_48 = arith.constant 0 : index
    %c0_49 = arith.constant 0 : index
    %105 = vector.load %arg15[%c0_48, %c0_49] : memref<32x144xbf16, #tpu.memory_space<vmem>>, vector<32x144xbf16>
    %c0_50 = arith.constant 0 : index
    %c0_51 = arith.constant 0 : index
    %106 = vector.load %arg11[%c0_50, %c0_51] : memref<144x16xbf16, #tpu.memory_space<vmem>>, vector<144x16xbf16>
    %cst_52 = arith.constant dense<0.000000e+00> : vector<32x16xf32>
    %107 = tpu.matmul %105, %106, %cst_52 {dimension_numbers = #tpu.dot_dimension_numbers<[1], [0], [0], [1], [0, 0, 1, 1], [], []>} : vector<32x144xbf16>, vector<144x16xbf16>, vector<32x16xf32> -> vector<32x16xf32>
    %c0_53 = arith.constant 0 : index
    %c0_54 = arith.constant 0 : index
    %108 = vector.load %arg12[%c0_53, %c0_54] : memref<1x16xf32, #tpu.memory_space<vmem>>, vector<1x16xf32>
    %109 = vector.broadcast %108 : vector<1x16xf32> to vector<32x16xf32>
    %110 = arith.addf %107, %109 : vector<32x16xf32>
    %cst_55 = arith.constant 0.000000e+00 : f32
    %111 = vector.broadcast %cst_55 : f32 to vector<32x16xf32>
    %112 = arith.maximumf %110, %111 : vector<32x16xf32>
    %113 = arith.mulf %112, %51 : vector<32x16xf32>
    %c0_56 = arith.constant 0 : index
    %c0_57 = arith.constant 0 : index
    %c0_58 = arith.constant 0 : index
    %c0_59 = arith.constant 0 : index
    %114 = vector.load %arg13[%c0_56, %c0_57, %c0_58, %c0_59] : memref<1x1x32x16xf32, #tpu.memory_space<vmem>>, vector<1x1x32x16xf32>
    %115 = vector.shape_cast %114 : vector<1x1x32x16xf32> to vector<32x16xf32>
    %116 = vector.shape_cast %113 : vector<32x16xf32> to vector<1x1x32x16xf32>
    tpu.vector_store %arg13[%c0_56, %c0_57, %c0_58, %c0_59], %116 {strides = array<i32>} : memref<1x1x32x16xf32, #tpu.memory_space<vmem>>, vector<1x1x32x16xf32>,
    return
  }
  func.func @transform_0(%arg0: i32, %arg1: i32) -> (i32, i32) {
    %c0_i32 = arith.constant 0 : i32
    %c0_i32_0 = arith.constant 0 : i32
    %c0_i32_1 = arith.constant 0 : i32
    return %c0_i32, %c0_i32_0 : i32, i32
  }
  func.func @transform_1(%arg0: i32, %arg1: i32) -> (i32, i32, i32, i32) {
    %c0_i32 = arith.constant 0 : i32
    %c0_i32_0 = arith.constant 0 : i32
    %c0_i32_1 = arith.constant 0 : i32
    return %arg0, %arg1, %c0_i32, %c0_i32_0 : i32, i32, i32, i32
  }
  func.func @transform_2(%arg0: i32, %arg1: i32) -> (i32, i32, i32, i32) {
    %c0_i32 = arith.constant 0 : i32
    %c0_i32_0 = arith.constant 0 : i32
    %c0_i32_1 = arith.constant 0 : i32
    return %arg0, %arg1, %c0_i32, %c0_i32_0 : i32, i32, i32, i32
  }
  func.func @transform_3(%arg0: i32, %arg1: i32) -> (i32, i32) {
    %c0_i32 = arith.constant 0 : i32
    %c0_i32_0 = arith.constant 0 : i32
    %c0_i32_1 = arith.constant 0 : i32
    return %c0_i32, %c0_i32_0 : i32, i32
  }
  func.func @transform_4(%arg0: i32, %arg1: i32) -> (i32, i32) {
    %c0_i32 = arith.constant 0 : i32
    %c0_i32_0 = arith.constant 0 : i32
    %c0_i32_1 = arith.constant 0 : i32
    return %c0_i32, %c0_i32_0 : i32, i32
  }
  func.func @transform_5(%arg0: i32, %arg1: i32) -> (i32, i32) {
    %c0_i32 = arith.constant 0 : i32
    %c0_i32_0 = arith.constant 0 : i32
    %c0_i32_1 = arith.constant 0 : i32
    return %c0_i32, %c0_i32_0 : i32, i32
  }
  func.func @transform_6(%arg0: i32, %arg1: i32) -> (i32, i32) {
    %c0_i32 = arith.constant 0 : i32
    %c0_i32_0 = arith.constant 0 : i32
    %c0_i32_1 = arith.constant 0 : i32
    return %c0_i32, %c0_i32_0 : i32, i32
  }
  func.func @transform_7(%arg0: i32, %arg1: i32) -> (i32, i32) {
    %c0_i32 = arith.constant 0 : i32
    %c0_i32_0 = arith.constant 0 : i32
    %c0_i32_1 = arith.constant 0 : i32
    return %c0_i32, %c0_i32_0 : i32, i32
  }
  func.func @transform_8(%arg0: i32, %arg1: i32) -> (i32, i32) {
    %c0_i32 = arith.constant 0 : i32
    %c0_i32_0 = arith.constant 0 : i32
    %c0_i32_1 = arith.constant 0 : i32
    return %c0_i32, %c0_i32_0 : i32, i32
  }
  func.func @transform_9(%arg0: i32, %arg1: i32) -> (i32, i32) {
    %c0_i32 = arith.constant 0 : i32
    %c0_i32_0 = arith.constant 0 : i32
    %c0_i32_1 = arith.constant 0 : i32
    return %c0_i32, %c0_i32_0 : i32, i32
  }
  func.func @transform_10(%arg0: i32, %arg1: i32) -> (i32, i32) {
    %c0_i32 = arith.constant 0 : i32
    %c0_i32_0 = arith.constant 0 : i32
    %c0_i32_1 = arith.constant 0 : i32
    return %c0_i32, %c0_i32_0 : i32, i32
  }
  func.func @transform_11(%arg0: i32, %arg1: i32) -> (i32, i32, i32, i32) {
    %c0_i32 = arith.constant 0 : i32
    %c0_i32_0 = arith.constant 0 : i32
    %c0_i32_1 = arith.constant 0 : i32
    return %arg0, %arg1, %c0_i32, %c0_i32_0 : i32, i32, i32, i32
  }
  func.func @transform_12(%arg0: i32, %arg1: i32) -> (i32, i32, i32, i32) {
    %c0_i32 = arith.constant 0 : i32
    %c0_i32_0 = arith.constant 0 : i32
    %c0_i32_1 = arith.constant 0 : i32
    return %arg0, %arg1, %c0_i32, %c0_i32_0 : i32, i32, i32, i32
  }
}

</mosaic_0001>

<bundles_post_ra>
// kernel: tpu_custom_call.1
= control target key start
LH: loop header
LB: loop body
LE: loop exit
PB: predicated region body
PF: predicated region fallthrough
CT: control target
= control target key end

     0   :  { %s2904_s0 = inlined_call_operand.vmem [shape: s32[32,1], index: 0, kind: input, shape index: {}]   ;;  %s2905_s1 = inlined_call_operand.vmem [shape: bf16[2,2,56,8], index: 1, kind: input, shape index: {}]   ;;  %s2906_s2 = inlined_call_operand.vmem [shape: bf16[2,2,56,16], index: 2, kind: input, shape index: {}]   ;;  %s2907_s3 = inlined_call_operand.vmem [shape: bf16[8,16], index: 3, kind: input, shape index: {}]   ;;  %s2908_s4 = inlined_call_operand.vmem [shape: f32[1,16], index: 4, kind: input, shape index: {}]   ;;  %s2909_s5 = inlined_call_operand.vmem [shape: bf16[16,4], index: 5, kind: input, shape index: {}]   ;;  %s2910_s6 = inlined_call_operand.vmem [shape: f32[1,4], index: 6, kind: input, shape index: {}]   ;;  %s2911_s7 = inlined_call_operand.vmem [shape: bf16[4,16], index: 7, kind: input, shape index: {}]   ;;  %s2912_s8 = inlined_call_operand.vmem [shape: f32[1,16], index: 8, kind: input, shape index: {}]   ;;  %s2913_s9 = inlined_call_operand.vmem [shape: bf16[144,16], index: 9, kind: input, shape index: {}]   ;;  %s2914_s10 = inlined_call_operand.vmem [shape: f32[1,16], index: 10, kind: input, shape index: {}]   ;;  %s2915_s11 = inlined_call_operand.vmem [shape: f32[2,2,32,16], index: 11, kind: output, shape index: {0}]   ;;  %s2916_s12 = inlined_call_operand.hbm [shape: f32[2,2,1,16], index: 12, kind: output, shape index: {1}]  }
   0x1   :  { %2923 = sst [smem:[#allocation10_spill]] %s2904_s0 }
   0x2   :  { %2924 = sst [smem:[#allocation11_spill]] %s2905_s1 }
   0x3   :  { %2925 = sst [smem:[#allocation12_spill]] %s2906_s2 }
   0x4   :  { %2926 = sst [smem:[#allocation13_spill]] %s2907_s3 }
   0x5   :  { %2927 = sst [smem:[#allocation14_spill]] %s2908_s4 }
   0x6   :  { %2928 = sst [smem:[#allocation15_spill]] %s2909_s5 }
   0x7   :  { %2929 = sst [smem:[#allocation16_spill]] %s2910_s6 }
   0x8   :  { %18 = vsyncpa [#allocation4], 0 }
   0x9   :  { %20 = vsyncpa [#allocation4 + $0x1], 0  ;;  %s2158_s21 = smov 0   ;;  %s2160_s22 = smov 0  }
   0xa   :  { %s2162_s23 = smov 0   ;;  %s2164_s24 = smov 0  }
   0xb   :  { %s2166_s25 = smov 0   ;;  %s2168_s26 = smov 0  }
   0xc   :  { %s2170_s27 = smov 0   ;;  %s2172_s28 = smov 0  }
   0xd LB: > { %2930 = sst [smem:[#allocation6_spill]] %s2074_s26  ;;  %s1726_s29 = sadd.s32 4294967295, %s2082_s28   ;;  %s2082_s28 = sphi %s2172_s28, %s26_s28   ;;  %s2078_s27 = sphi %s2170_s27, %s2985_s27   ;;  %s2074_s26 = sphi %s2168_s26, %s2984_s26   ;;  %s2070_s25 = sphi %s2166_s25, %s2983_s25   ;;  %s2066_s24 = sphi %s2164_s24, %s2982_s24   ;;  %s2062_s23 = sphi %s2162_s23, %s2988_s23   ;;  %s2058_s22 = sphi %s2160_s22, %s2987_s22   ;;  %s2054_s21 = sphi %s2158_s21, %s2986_s21  }
   0xe   : > { %2931 = sst [smem:[#allocation7_spill]] %s2078_s27  ;;  %s1727_s30 = sadd.s32 4294967294, %s2082_s28  }
   0xf   : > { %s35_s13 = sadd.s32 1, %s2074_s26  ;;  %s38_s14 = sadd.s32 1, %s2078_s27 }
  0x10   : > { %p36_p0 = scmp.ge.s32.totalorder %s35_s13, 2  ;;  %p330_p1 = scmp.ne.s32.totalorder %s2062_s23, %s2058_s22 }
  0x11   : > { %p331_p2 = scmp.eq.s32.totalorder %s1726_s29, 3  ;;  %p336_p5 = scmp.ne.s32.totalorder %s2058_s22, %s2054_s21 }
  0x12   : > { %s2990_s13 = smov (%p36_p0, %s35_s13), 0  ;;  %s2992_s14 = smov (!%p36_p0, %s38_s14), %s2078_s27 }
  0x13   : > { %2932 = sst [smem:[#allocation8_spill]] %s2990_s13  ;;  %s316_s15 = ssub.s32 %s2074_s26, %s2990_s13 }
  0x14   : > { %p2209_p3 = por %p331_p2, %p330_p1  ;;  %p40_p4 = scmp.ge.s32.totalorder %s2992_s14, 2 }
  0x15   : > { %p337_p6 = scmp.eq.s32.totalorder %s1727_s30, 3  ;;  %p1730_p7 = scmp.ge.s32.totalorder %s2082_s28, 1 }
  0x16   : > { %s2994_s14 = smov (%p40_p4, %s2992_s14), 0  ;;  %p406_p9 = scmp.lt.s32.totalorder %s2082_s28, 5 }
  0x17   : > { %2934 = sst [smem:[#allocation9_spill]] %s2994_s14  ;;  %p2218_p8 = por %p337_p6, %p336_p5 }
  0x18   : > { %s315_s18 = ssub.s32 %s2078_s27, %s2994_s14  ;;  %s320_s19 = sadd.s32 1, %s2062_s23 }
  0x19   : > { %s317_s20 = sor.u32 %s316_s15, %s315_s18  ;;  %p407_p10 = pnand %p1730_p7, %p406_p9 }
  0x1a   : > { %p318_p11 = scmp.eq.s32.totalorder %s317_s20, 0  ;;  %s2936_s3 = sld [smem:[#allocation13_spill]] (!%p407_p10) }
  0x1b   : > { %410 = sbr.rel (%p407_p10) target bundleno = 635 (0x27b), region = 64  ;;  %p469_p12 = scmp.lt.s32.totalorder (!%p407_p10), %s2070_s25, 1 }
  0x1c   : > { %s2227_s29 = scalar_select %p318_p11, %s2062_s23, %s320_s19  }
  0x1d   : > { %p471_p13 = scmp.lt.s32.totalorder (!%p407_p10), %s2066_s24, 1  ;;  %s2937_s0 = sld [smem:[#allocation10_spill]] (!%p407_p10) }
  0x1e   : > { %s2938_s5 = sld [smem:[#allocation15_spill]] (!%p407_p10)  ;;  %s2087_s26 = smov (!%p407_p10), 64  }
  0x1f   : > { %s2939_s1 = sld [smem:[#allocation11_spill]] (!%p407_p10)  ;;  %s2089_s14 = smov (!%p407_p10), 80  }
  0x20   : > { %v513_v0 = vld [vmem:[%s2936_s3] sm:$0xf]  ;;  %vm552_vm0 = vcmask 1043456   ;;  %s2244_s20 = scalar_select %p469_p12, %s2070_s25, 1  ;;  %v2084_v5 = vmov 0   ;;  %vm539_vm7 = vcmask 64512   ;;  %v627_v36 = vlaneseq }
  0x21   : > { %1864 = vmatprep.subr.msk.bf16.mxu1 %vm552_vm0, %v513_v0  ;;  %v554_v1 = vsel %vm552_vm0, %v513_v0, 0  ;;  %1948 = vset.pattern.permute.xlu1 %v2084_v5  ;;  %s2253_s18 = scalar_select %p471_p13, %s2066_s24, 1  ;;  %vm761_vm10 = vsmask.f32 7424  ;;  %vm723_vm11 = vcmask 130048  }
  0x22   : > { %1843 = vmatpush3.bf16.msra.mxu1 %v554_v1  ;;  %1947 = vset.pattern.permute.xlu0 %v2084_v5  ;;  %s1867_s13 = smul.u32 14, %s2244_s20  ;;  %s2940_s2 = sld [smem:[#allocation12_spill]]  ;;  %v628_v38 = vshrl.u32 %v627_v36, 7 }
  0x23   : > { %v943_v2 = vld [vmem:[%s2937_s0 + $0x10] sm:$0xff]  ;;  %v941_v3 = vld [vmem:[%s2937_s0] sm:$0xff]  ;;  %v944_v4 = vld [vmem:[%s2937_s0 + $0x18] sm:$0xff]  ;;  %1499 = vmatprep.subr.bf16.mxu0 %v2084_v5  ;;  %s1866_s30 = smul.u32 7, %s2253_s18  ;;  %s2945_s4 = sld [smem:[#allocation14_spill]] }
  0x24   : > { %vm951_vm1 = vcmp.lt.s32.totalorder %v943_v2, 7  ;;  %vm949_vm2 = vcmp.lt.s32.totalorder %v941_v3, 7  ;;  %vm952_vm3 = vcmp.lt.s32.totalorder %v944_v4, 7  ;;  %v942_v6 = vld [vmem:[%s2937_s0 + $0x8] sm:$0xff]  ;;  %vm945_vm5 = vcmp.gt.s32.totalorder %v941_v3, 0  ;;  %v1953_v9 = vld [vmem:[%s2938_s5] sm:$0xff]  }
  0x25   : > { %v1089_v7 = vsel %vm951_vm1, 1, %v2084_v5  ;;  %v1087_v8 = vsel %vm949_vm2, 1, %v2084_v5  ;;  %vm950_vm4 = vcmp.lt.s32.totalorder %v942_v6, 7  ;;  %v1090_v10 = vsel %vm952_vm3, 1, %v2084_v5  ;;  %1852 = vmatprep.subr.bf16.mxu1 %v1953_v9  ;;  %s475_s15 = sadd.s32 %s1867_s13, %s1866_s30  ;;  %s2086_s30 = smov 48  }
  0x26   : > { %1098 = vperm.xlu1 %1948, %v1089_v7   ;;  %1092 = vperm.xlu0 %1947, %v1087_v8   ;;  %v1088_v11 = vsel %vm950_vm4, 1, %v2084_v5  ;;  %vm946_vm6 = vcmp.gt.s32.totalorder %v942_v6, 0  ;;  %v953_v12 = vsel %vm945_vm5, 1, %v2084_v5  ;;  %s1731_s0 = sshll.u32 %s475_s15, 2  ;;  %vm948_vm8 = vcmp.gt.s32.totalorder %v944_v4, 0  ;;  %s2090_s13 = smov 16  }
  0x27   : > { %v954_v13 = vsel %vm946_vm6, 1, %v2084_v5  ;;  %s477_s3 = scalar_lea.vmem %s2939_s1, %s1731_s0  ;;  %vm947_vm9 = vcmp.gt.s32.totalorder %v943_v2, 0  ;;  %v956_v17 = vsel %vm948_vm8, 1, %v2084_v5  ;;  %v630_v41 = vadd.s32 16, %v628_v38  ;;  %s2091_s15 = smov 32  }
  0x28   : > { %s2274_s27 = scalar_lea.vmem %s2940_s2, %s1731_s0  ;;  %v1949_v14 = vld [vmem:[%s477_s3] sm:$0xff]   ;;  %v1950_v15 = vld [vmem:[%s477_s3 + $0x8] sm:$0xff]   ;;  %v1951_v16 = vld [vmem:[%s477_s3 + $0x10] sm:$0xff]   ;;  %v955_v19 = vsel %vm947_vm9, 1, %v2084_v5  ;;  %s1745_s0 = sshll.u32 %s2066_s24, 5  ;;  %v631_v43 = vadd.s32 24, %v628_v38 }
  0x29   : > { %1844 = vmatprep.mubr.msk.bf16.mxu1 %vm539_vm7, %v1949_v14  ;;  %v2280_v18 = vld [vmem:[%s2274_s27 + $0x4] sm:$0xff]   ;;  %v2285_v20 = vld [vmem:[%s2274_s27 + $0xc] sm:$0xff]   ;;  %v2288_v21 = vld [vmem:[%s2274_s27 + $0x14] sm:$0xf]  ;;  %v2300_v42 = vstv %s1745_s0  ;;  %v629_v44 = vadd.s32 8, %v628_v38  ;;  %v634_v52 = vadd.s32 48, %v628_v38 }
  0x2a   : > { %1101 = vperm.xlu1 %1948, %v1090_v10   ;;  %1095 = vperm.xlu0 %1947, %v1088_v11   ;;  %v1749_v22 = vcombine.low %v2288_v21, %v2288_v21  ;;  %v763_v23 = vshrl.u32 %v2280_v18, 16  ;;  %v765_v24 = vshll.u32 %v2280_v18, 16  ;;  %v1952_v25 = vld [vmem:[%s477_s3 + $0x18] ss:$0 sps:$4 sm:$0xff]   ;;  %v770_v26 = vshll.u32 %v2285_v20, 16  ;;  %s2088_s0 = smov 112  }
  0x2b   : > { %1845 = vmatmul.mubr.msk.bf16.vlgmr.msra.gmra.mxu1 %vm539_vm7, %v1950_v15  ;;  %v774_v27 = vshrl.u32 %v2285_v20, 16  ;;  %v639_v45 = vadd.s32 %v2300_v42, %v630_v41  ;;  %v637_v48 = vadd.s32 %v2300_v42, %v628_v38  ;;  %v640_v49 = vadd.s32 %v2300_v42, %v631_v43  ;;  %v2306_v50 = vld [vmem:[%s2274_s27] ss:$24 sps:$4 sm:$0xff]   ;;  %s2921_s27 = smov 96   ;;  %s2976_s6 = sld [smem:[#allocation16_spill]] }
  0x2c   : > { %1848 = vmatprep.mubr.msk.bf16.mxu1 %vm539_vm7, %v1951_v16  ;;  %1853 = vmatpush3.bf16.msra.mxu1 %v1953_v9  ;;  %v767_v28 = vrot.slane %v765_v24, 1  ;;  %v778_v29 = vshll.u32 %v1749_v22, 16  ;;  %v772_v30 = vrot.slane %v770_v26, 1  ;;  %v2309_v51 = vadd.s32 %v2300_v42, %v629_v44  ;;  %v2322_v56 = vld [vmem:[%s2945_s4] ss:$0 sm:$0xff]  ;;  %s467_s3 = sand.u32 1, %s2058_s22  }
  0x2d   : > { %v632_v54 = vadd.s32 32, %v628_v38  ;;  %vm646_vm2 = vcmp.ge.s32.totalorder %v639_v45, 9  ;;  %vm653_vm3 = vcmp.lt.s32.totalorder %v639_v45, 73  ;;  %v688_v57 = vunpack.c.h.bf16 %v2280_v18  ;;  %s2981_s5 = smov 96   ;;  %s2092_s2 = smov [#allocation3]  }
  0x2e   : > { %961 = vperm.xlu1 %1948, %v954_v13   ;;  %958 = vperm.xlu0 %1947, %v953_v12   ;;  %v768_v31 = vor.u32 %v767_v28, %v763_v23  ;;  %v776_v33 = vor.u32 %v774_v27, %v772_v30  ;;  %v780_v34 = vrot.slane %v778_v29, 1  ;;  %vm644_vm5 = vcmp.ge.s32.totalorder %v637_v48, 9  ;;  %s1994_s4 = sshll.u32 %s2092_s2, 4  ;;  %s1995_s4 = int_to_ptr.vmem [resolvable:$false] %s1994_s4 }
  0x2f   : > { %vm651_vm6 = vcmp.lt.s32.totalorder %v637_v48, 73  ;;  %v686_v59 = vunpack.c.l.bf16 %v2306_v50  ;;  %vm654_vm9 = vcmp.lt.s32.totalorder %v640_v49, 73  ;;  %v689_v62 = vunpack.c.l.bf16 %v2285_v20 }
  0x30   : > { %v773_v32 = vsel %vm761_vm10, %v768_v31, %v772_v30  ;;  %v781_v35 = vsel %vm761_vm10, %v776_v33, %v780_v34  ;;  %vm645_vm10 = vcmp.ge.s32.totalorder %v2309_v51, 9  ;;  %v2337_v63 = vadd.s32 %v2300_v42, %v634_v52 }
  0x31   : > { %v687_v3 = vunpack.c.l.bf16 %v2280_v18  ;;  %v2343_v4 = vadd.s32 %v2300_v42, %v632_v54  ;;  %v633_v16 = vadd.s32 40, %v628_v38  ;;  %v692_v28 = vunpack.c.h.bf16 %v2306_v50 }
  0x32   : > { %967 = vperm.xlu1 %1948, %v956_v17   ;;  %964 = vperm.xlu0 %1947, %v955_v19   ;;  %v690_v36 = vunpack.c.h.bf16 %v2285_v20 }
  0x33   : > { %1849 = vmatmul.mubr.msk.bf16.gmra.mxu1 %vm539_vm7, %v1952_v25  ;;  %vm647_vm7 = vcmp.ge.s32.totalorder %v640_v49, 9 }
  0x34   : > { %1854 = vmatprep.mubr.msk.bf16.mxu1 %vm723_vm11, %v773_v32 }
  0x3b   : > { %1855 = vmatmul.mubr.msk.bf16.vlgmr.msra.gmra.mxu1 %vm723_vm11, %v781_v35 }
  0xa1   : > { %v1093_v37 = vpop.permute.xlu0 %1092  ;;  %v1099_v39 = vpop.permute.xlu1 %1098 }
  0xa2   : > { %vm1105_vm12 = vcmp.eq.s32.totalorder %v1099_v39, 1  ;;  %vm1103_vm13 = vcmp.eq.s32.totalorder %v1093_v37, 1  ;;  %v642_v37 = vadd.s32 %v2300_v42, %v633_v16 }
  0xa3   : > { %vm2311_vm15 = vmpackc.low %vm1105_vm12, %vm1105_vm12  ;;  %vm652_vm12 = vcmp.lt.s32.totalorder %v2309_v51, 73 }
  0xa4   : > { %vm2315_vm1 = vmpackc.low %vm1103_vm13, %vm1103_vm13  ;;  %v1113_v6 = vsel %vm2311_vm15, 65537, %v2084_v5 }
  0xa5   : > { %v1096_v40 = vpop.permute.xlu0 %1095  ;;  %v1102_v46 = vpop.permute.xlu1 %1101  ;;  %v1111_v7 = vsel %vm2315_vm1, 65537, %v2084_v5  ;;  %vm2362_vm15 = vmand %vm644_vm5, %vm651_vm6  ;;  %vm1243_vm5 = vcmask 1044480  }
  0xa6   : > { %vm1106_vm14 = vcmp.eq.s32.totalorder %v1102_v46, 1  ;;  %vm1104_vm0 = vcmp.eq.s32.totalorder %v1096_v40, 1 }
  0xa7   : > { %vm2325_vm4 = vmpackc.low %vm1106_vm14, %vm1106_vm14 }
  0xa8   : > { %vm2330_vm8 = vmpackc.low %vm1104_vm0, %vm1104_vm0  ;;  %v1114_v8 = vsel %vm2325_vm4, 65537, %v2084_v5  ;;  %vm657_vm4 = vcmp.lt.s32.totalorder %v2337_v63, 73 }
  0xa9   : > { %v959_v47 = vpop.permute.xlu0 %958  ;;  %v962_v0 = vpop.permute.xlu1 %961  ;;  %vm660_vm14 = vmand %vm646_vm2, %vm653_vm3  ;;  %v1112_v10 = vsel %vm2330_vm8, 65537, %v2084_v5  ;;  %vm650_vm3 = vcmp.ge.s32.totalorder %v2337_v63, 9  ;;  %v2381_v24 = vcombine.low %v1113_v6, %v1114_v8 }
  0xaa   : > { %vm970_vm13 = vcmp.eq.s32.totalorder %v962_v0, 1  ;;  %vm969_vm0 = vcmp.eq.s32.totalorder %v959_v47, 1  ;;  %vm2368_vm2 = vmand %vm647_vm7, %vm654_vm9  ;;  %v2383_v25 = vcombine.low %v1111_v7, %v1112_v10  ;;  %vm1121_vm7 = vcmask 1040384   ;;  %v1965_v7 = vld [vmem:[%s2913_s9 + $0x40] sm:$0xff]  }
  0xab   : > { %vm2374_vm8 = vmpackc.low %vm970_vm13, %vm970_vm13  ;;  %vm648_vm13 = vcmp.ge.s32.totalorder %v2343_v4, 9  ;;  %v1245_v43 = vrot.slane %v2381_v24, 3  ;;  %v1123_v52 = vrot.slane %v2381_v24, 7 }
  0xac   : > { %vm2387_vm6 = vmpackc.low %vm969_vm0, %vm969_vm0  ;;  %v978_v33 = vsel %vm2374_vm8, 65537, %v2084_v5  ;;  %v1244_v44 = vrot.slane %v2383_v25, 3  ;;  %v1122_v53 = vrot.slane %v2383_v25, 7  ;;  %vm1023_vm8 = vsmask.f32 3328 }
  0xad   : > { %v965_v1 = vpop.permute.xlu0 %964  ;;  %vm659_vm0 = vmand %vm645_vm10, %vm652_vm12  ;;  %v977_v38 = vsel %vm2387_vm6, 65537, %v2084_v5  ;;  %vm649_vm12 = vcmp.ge.s32.totalorder %v642_v37, 9 }
  0xae   : > { %vm971_vm1 = vcmp.eq.s32.totalorder %v965_v1, 1  ;;  %v1760_v54 = vcombine.low %v977_v38, %v978_v33  ;;  %v1779_v55 = vcombine.low %v977_v38, %v977_v38  ;;  %vm664_vm10 = vmand %vm650_vm3, %vm657_vm4  ;;  %v2452_v63 = vsel %vm1243_vm5, %v1244_v44, %v1245_v43 }
  0xaf   : > { %vm2394_vm9 = vmpackc.low %vm971_vm1, %vm971_vm1  ;;  %vm709_vm1 = vcmask 1046528   ;;  %vm1024_vm5 = vsmask.f32 7440  ;;  %v2468_v8 = vsel %vm1121_vm7, %v1122_v53, %v1123_v52 }
  0xb0   : > { %v2426_v45 = vsel %vm2394_vm9, 65537, %v2084_v5  ;;  %vm2458_vm3 = vcmp.ne.s16.totalorder %v1760_v54, 0  ;;  %vm2462_vm4 = vcmp.ne.s16.totalorder %v1779_v55, 0  ;;  %vm2475_vm9 = vcmp.ne.s16.totalorder %v1122_v53, 0 }
  0xeb   : > { %v1846_v61 = vpop.f32.mrf.mxu1 }
  0xec   : > { %v599_v2 = vadd.f32 %v1846_v61, %v2322_v56 }
  0xed   : > { %v590_v9 = vpop.f32.mrf.mxu1 }
  0xee   : > { %v622_v11 = vmax.f32 %v599_v2, 0.0  ;;  %v591_v12 = vadd.f32 %v2322_v56, %v590_v9 }
  0xef   : > { %v1847_v14 = vpop.f32.mrf.mxu1 }
  0xf0   : > { %v2378_v19 = vsel %vm660_vm14, %v622_v11, 0.0  ;;  %v620_v22 = vmax.f32 %v591_v12, 0.0  ;;  %v602_v23 = vadd.f32 %v1847_v14, %v2322_v56  ;;  %vm655_vm14 = vcmp.lt.s32.totalorder %v2343_v4, 73 }
  0xf1   : > { %v593_v27 = vpop.f32.mrf.mxu1  ;;  %v695_v30 = vadd.f32 %v688_v57, %v2378_v19  ;;  %vm662_vm7 = vmand %vm648_vm13, %vm655_vm14  ;;  %vm1144_vm13 = vcmask 1042432   ;;  %vm1145_vm14 = vcmask 1046532  }
  0xf2   : > { %v623_v31 = vmax.f32 %v602_v23, 0.0  ;;  %v594_v32 = vadd.f32 %v2322_v56, %v593_v27  ;;  %v679_v34 = vsel %vm2362_vm15, %v620_v22, 0.0  ;;  %vm656_vm15 = vcmp.lt.s32.totalorder %v642_v37, 73  ;;  %v1957_v37 = vld [vmem:[%s2913_s9 + $0x38] sm:$0xff]  }
  0xf3   : > { %v1850_v35 = vpop.f32.mrf.mxu1  ;;  %v1826_v47 = vpack.c.bf16 %v695_v30, %v695_v30  ;;  %v693_v48 = vadd.f32 %v686_v59, %v679_v34  ;;  %v1780_v59 = vcombine.low %v978_v33, %v2426_v45  ;;  %vm663_vm6 = vmand %vm649_vm12, %vm656_vm15  ;;  %vm1126_vm12 = vcmp.ne.s16.totalorder %v2468_v8, 0  ;;  %1500 = vmatpush1.bf16.msra.mxu0 %v1957_v37 }
  0xf4   : > { %v2418_v39 = vsel %vm2368_vm2, %v623_v31, 0.0  ;;  %v621_v40 = vmax.f32 %v594_v32, 0.0  ;;  %v615_v41 = vadd.f32 %v1850_v35, %v2322_v56  ;;  %vm2454_vm2 = vcmp.ne.s16.totalorder %v1123_v52, 0  ;;  %1501 = vmatprep.subr.bf16.mxu0 %v2084_v5  ;;  %vm2545_vm15 = vmor %vm1023_vm8, %vm1024_vm5 }
  0xf5   : > { %v696_v42 = vadd.f32 %v689_v62, %v2418_v39  ;;  %v606_v46 = vpop.f32.mrf.mxu1  ;;  %v691_v62 = vunpack.c.l.bf16 %v2288_v21  ;;  %v1046_v0 = vshll.u32 %v1826_v47, 16  ;;  %v1050_v1 = vshrl.u32 %v1826_v47, 16  ;;  %vm2597_vm5 = vmor %vm1144_vm13, %vm1145_vm14 }
  0xf6   : > { %v2431_v49 = vsel %vm659_vm0, %v621_v40, 0.0  ;;  %v626_v51 = vmax.f32 %v615_v41, 0.0  ;;  %v607_v50 = vadd.f32 %v2322_v56, %v606_v46  ;;  %v1824_v2 = vpack.c.bf16 %v693_v48, %v693_v48 }
  0xf7   : > { %v1851_v57 = vpop.f32.mrf.mxu1  ;;  %v2439_v58 = vpack.c.bf16 %v696_v42, %v695_v30  ;;  %v694_v60 = vadd.f32 %v687_v3, %v2431_v49  ;;  %v1827_v9 = vpack.c.bf16 %v696_v42, %v696_v42  ;;  %vm1181_vm0 = vcmp.ne.s16.totalorder %v1780_v59, 0 }
  0xf8   : > { %v685_v6 = vsel %vm664_vm10, %v626_v51, 0.0  ;;  %v624_v11 = vmax.f32 %v607_v50, 0.0  ;;  %vm1248_vm10 = vcmp.ne.s16.totalorder %v2452_v63, 0  ;;  %v2486_v15 = vrot.slane %v1046_v0, 5  ;;  %v1958_v50 = vld [vmem:[%s2913_s9 + $0x30] sm:$0xff]  }
  0xf9   : > { %v609_v61 = vpop.f32.mrf.mxu1  ;;  %v699_v10 = vadd.f32 %v692_v28, %v685_v6  ;;  %v1296_v12 = vsel %vm2458_vm3, %v2439_v58, 0  ;;  %v1052_v16 = vrot.slane %v1050_v1, 4  ;;  %v1027_v17 = vshrl.u32 %v1824_v2, 16  ;;  %1502 = vmatpush1.bf16.msra.mxu0 %v1958_v50 }
  0xfa   : > { %v610_v3 = vadd.f32 %v2322_v56, %v609_v61  ;;  %v2479_v56 = vpack.c.bf16 %v694_v60, %v694_v60  ;;  %v1793_v22 = vcombine.low %v1296_v12, %v1296_v12  ;;  %v1030_v23 = vshll.u32 %v1824_v2, 16  ;;  %1503 = vmatprep.subr.bf16.mxu0 %v2084_v5 }
  0xfb   : > { %v710_v26 = vrot.slane %v2431_v49, 1  ;;  %v1184_v28 = vsel %vm1181_vm0, %v2439_v58, 0  ;;  %v1060_v29 = vshrl.u32 %v1827_v9, 16  ;;  %v2492_v30 = vpack.c.bf16 %v694_v60, %v693_v48  ;;  %v2523_v49 = vpop.permute.xlu1 %967 }
  0xfc   : > { %v625_v14 = vmax.f32 %v610_v3, 0.0  ;;  %v2494_v4 = vpack.c.bf16 %v699_v10, %v699_v10  ;;  %v2496_v31 = vsel %vm662_vm7, %v624_v11, 0.0  ;;  %1308 = vrot.lane.b32.xlu0 %v1793_v22, %s2921_s27  ;;  %v711_v32 = vrot.slane %v2378_v19, 1 }
  0xfd   : > { %v1040_v33 = vshrl.u32 %v2479_v56, 16  ;;  %v1783_v35 = vcombine.low %v1184_v28, %v1184_v28  ;;  %v2507_v38 = vrot.slane %v1027_v17, 4  ;;  %v713_v40 = vrot.slane %v2418_v39, 1 }
  0xfe   : > { %v2489_v27 = vsel %vm663_vm6, %v625_v14, 0.0  ;;  %v1784_v41 = vcombine.high %v1184_v28, %v1184_v28  ;;  %v2511_v42 = vrot.slane %v1030_v23, 5  ;;  %v2516_v46 = vsel %vm709_vm1, %v710_v26, %v711_v32 }
  0xff   : > { %v2502_v34 = vadd.f32 %v691_v62, %v2489_v27  ;;  %v697_v47 = vadd.f32 %v690_v36, %v2496_v31  ;;  %1199 = vrot.lane.b32.xlu1 %v1783_v35, %s2086_s30  ;;  %v1053_v48 = vor.u32 %v1052_v16, %v2486_v15  ;;  %v2525_v51 = vrot.slane %v1060_v29, 4 }
 0x100   : > { %v1357_v52 = vsel %vm2454_vm2, %v2494_v4, 0  ;;  %1201 = vrot.lane.b32.xlu0 %v1784_v41, %s2086_s30  ;;  %v1056_v53 = vshll.u32 %v1827_v9, 16  ;;  %v1183_v20 = vsel %vm2462_vm4, %v2492_v30, 0  ;;  %v2534_v36 = vrot.slane %v1040_v33, 4 }
 0x101   : > { %v2537_v54 = vpack.c.bf16 %v2502_v34, %v697_v47  ;;  %v1794_v55 = vcombine.high %v1296_v12, %v1296_v12  ;;  %v1054_v57 = vrot.slane %v1053_v48, 4  ;;  %v1782_v61 = vcombine.high %v1183_v20, %v1183_v20  ;;  %v1959_v48 = vld [vmem:[%s2913_s9 + $0x28] sm:$0xff]  }
 0x102   : > { %v2549_v60 = vrot.slane %v1056_v53, 5  ;;  %v1251_v62 = vsel %vm1248_vm10, %v2439_v58, 0  ;;  %vm1005_vm4 = vcmask 125952   ;;  %v2557_v0 = vsel %vm2475_vm9, %v2492_v30, 0  ;;  %1504 = vmatpush1.bf16.msra.mxu0 %v1959_v48 }
 0x103   : > { %vm2561_vm6 = vcmp.ne.s16.totalorder %v1244_v44, 0  ;;  %vm972_vm8 = vcmp.eq.s32.totalorder %v2523_v49, 1  ;;  %v1802_v2 = vcombine.low %v1357_v52, %v1357_v52  ;;  %v715_v6 = vrot.slane %v2496_v31, 1  ;;  %1310 = vrot.lane.b32.xlu1 %v1794_v55, %s2921_s27  ;;  %1505 = vmatprep.subr.bf16.mxu0 %v2084_v5  ;;  %s2793_s27 = scalar_lea.vmem [#allocation3], %s467_s3 }
 0x104   : > { %v1788_v63 = vcombine.low %v1251_v62, %v1251_v62  ;;  %v2571_v21 = vsel %vm1126_vm12, %v2439_v58, 0  ;;  %v2573_v3 = vpack.c.bf16 %v697_v47, %v697_v47  ;;  %1197 = vrot.lane.b32.xlu0 %v1782_v61, %s2086_s30  ;;  %v1789_v25 = vcombine.high %v1251_v62, %v1251_v62  ;;  %v2608_v47 = vpop.f32.mrf.mxu1 }
 0x105   : > { %v1774_v44 = vcombine.high %v2557_v0, %v2557_v0  ;;  %v1355_v9 = vsel %vm2475_vm9, %v2439_v58, 0  ;;  %v1059_v10 = vsel %vm2545_vm15, %v1054_v57, %v2549_v60  ;;  %v1356_v12 = vsel %vm1126_vm12, %v2537_v54, 0  ;;  %vm2656_vm9 = vmpackc.low %vm972_vm8, %vm972_vm8 }
 0x106   : > { %v2584_v11 = vrot.slane %v1788_v63, 5  ;;  %v1798_v14 = vcombine.low %v1355_v9, %v1355_v9  ;;  %v1775_v16 = vcombine.low %v2571_v21, %v2571_v21  ;;  %v1799_v13 = vcombine.high %v1355_v9, %v1355_v9  ;;  %v828_v9 = vpop.f32.mrf.mxu1 }
 0x107   : > { %v2592_v17 = vrot.slane %v1774_v44, 5  ;;  %v1800_v22 = vcombine.low %v1356_v12, %v1356_v12  ;;  %1228 = vrot.lane.b32.xlu1 %v1059_v10, %s2087_s26  ;;  %v1801_v26 = vcombine.high %v1356_v12, %v1356_v12  ;;  %v1033_v29 = vor.u32 %v2511_v42, %v2507_v38  ;;  %v1960_v12 = vld [vmem:[%s2913_s9 + $0x20] sm:$0xff]  }
 0x108   : > { %v1270_v8 = vrot.slane %v2584_v11, 4  ;;  %v1803_v28 = vrot.slane %v1798_v14, 9  ;;  %v2604_v33 = vrot.slane %v1789_v25, 5  ;;  %1338 = vrot.lane.b32.xlu0 %v1059_v10, %s2088_s0  ;;  %v1373_v35 = vrot.slane %v1799_v13, 5  ;;  %1506 = vmatpush1.bf16.msra.mxu0 %v1960_v12 }
 0x109   : > { %v1376_v37 = vrot.slane %v1800_v22, 5  ;;  %v1036_v41 = vshll.u32 %v2479_v56, 16  ;;  %v1382_v52 = vrot.slane %v1802_v2, 5  ;;  %v717_v53 = vrot.slane %v2489_v27, 1  ;;  %1507 = vmatprep.subr.bf16.mxu0 %v2084_v5 }
 0x10a   : > { %v1151_v38 = vrot.slane %v2592_v17, 4  ;;  %v1379_v42 = vrot.slane %v1801_v26, 5  ;;  %v1272_v20 = vsel %vm2597_vm5, %v1270_v8, %v2604_v33  ;;  %v1374_v55 = vsel %vm2597_vm5, %v1803_v28, %v1373_v35  ;;  %v1857_v26 = vpop.f32.mrf.mxu1 }
 0x10b   : > { %v1375_v56 = vrot.slane %v1373_v35, 4  ;;  %v1378_v57 = vrot.slane %v1376_v37, 4  ;;  %1281 = vrot.lane.b32.xlu1 %v1272_v20, %s2089_s14  ;;  %v2621_v50 = vrot.slane %v1775_v16, 5  ;;  %1388 = vst.msk [vmem:[#allocation2 + $0x4] sm:$0xf] %vm1005_vm4, %v1374_v55  ;;  %v1034_v27 = vrot.slane %v1033_v29, 4 }
 0x10c   : > { %v1381_v61 = vrot.slane %v1379_v42, 4  ;;  %v1038_v62 = vrot.slane %v1036_v41, 5  ;;  %1074 = vrot.lane.b32.xlu0 %v1059_v10, %s2090_s13  ;;  %v1773_v25 = vcombine.low %v2557_v0, %v2557_v0  ;;  %v1250_v44 = vsel %vm2561_vm6, %v2492_v30, 0  ;;  %v1746_v35 = vld [vmem:[%s2976_s6] ss:$0 sm:$0xff]  ;;  %v831_v55 = vpop.f32.mrf.mxu1  ;;  %s1996_s6 = scalar_lea.vmem %s1995_s4, 32 }
 0x10d   : > { %v1377_v2 = vsel %vm2597_vm5, %v1375_v56, %v1376_v37  ;;  %v1380_v63 = vsel %vm2597_vm5, %v1378_v57, %v1379_v42  ;;  %v714_v10 = vsel %vm709_vm1, %v711_v32, %v713_v40  ;;  %v716_v0 = vsel %vm709_vm1, %v713_v40, %v715_v6 }
 0x10e   : > { %v1383_v1 = vsel %vm2597_vm5, %v1381_v61, %v1382_v52  ;;  %1389 = vst.msk [vmem:[#allocation2 + $0xc] sm:$0xf] %vm1005_vm4, %v1377_v2  ;;  %1390 = vst.msk [vmem:[#allocation2 + $0x14] sm:$0xf] %vm1005_vm4, %v1380_v63  ;;  %v1043_v14 = vor.u32 %v2534_v36, %v1038_v62  ;;  %v724_v39 = vsel %vm723_vm11, %v2516_v46, 0.0  ;;  %v718_v32 = vsel %vm709_vm1, %v715_v6, %v717_v53  ;;  %v1961_v36 = vld [vmem:[%s2913_s9 + $0x18] sm:$0xff]  }
 0x10f   : > { %v1153_v40 = vsel %vm2597_vm5, %v1151_v38, %v2621_v50  ;;  %1391 = vst.msk [vmem:[#allocation2 + $0x1c] sm:$0xf] %vm1005_vm4, %v1383_v1  ;;  %v1066_v49 = vshll.u32 %v2573_v3, 16  ;;  %v1039_v31 = vsel %vm2545_vm15, %v1034_v27, %v1038_v62  ;;  %v1778_v6 = vrot.slane %v1773_v25, 9  ;;  %1508 = vmatpush1.bf16.msra.mxu0 %v1961_v36  ;;  %v849_v2 = vld [vmem:[%s2911_s7] sm:$0x3] }
 0x110   : > { %1162 = vrot.lane.b32.xlu1 %v1153_v40, %s2091_s15  ;;  %v1044_v46 = vrot.slane %v1043_v14, 4  ;;  %v1787_v16 = vcombine.high %v1250_v44, %v1250_v44  ;;  %v725_v13 = vsel %vm723_vm11, %v714_v10, 0.0  ;;  %v727_v22 = vsel %vm723_vm11, %v716_v0, 0.0  ;;  %1070 = vrot.lane.b32.xlu0 %v1039_v31, %s2090_s13 }
 0x111   : > { %v1063_v8 = vor.u32 %v2525_v51, %v2549_v60  ;;  %v980_v28 = vsel %vm2656_vm9, 65537, %v2084_v5  ;;  %v726_v29 = vadd.f32 %v725_v13, %v724_v39  ;;  %v729_v37 = vsel %vm723_vm11, %v718_v32, 0.0  ;;  %v1962_v51 = vld [vmem:[%s2913_s9 + $0x10] sm:$0xff]   ;;  %1509 = vmatprep.subr.bf16.mxu0 %v2084_v5  ;;  %v1964_v32 = vld [vmem:[%s2913_s9] sm:$0xff]  }
 0x112   : > { %v2692_v41 = vsel %vm2545_vm15, %v1044_v46, %v2486_v15  ;;  %v2694_v48 = vrot.slane %v1066_v49, 5  ;;  %v1781_v60 = vcombine.low %v980_v28, %v980_v28  ;;  %v1150_v53 = vsel %vm2597_vm5, %v1778_v6, %v2592_v17 }
 0x113   : > { %v728_v52 = vadd.f32 %v727_v22, %v726_v29  ;;  %v1792_v38 = vrot.slane %v1787_v16, 9  ;;  %v1761_v15 = vcombine.low %v2426_v45, %v980_v28  ;;  %v1064_v42 = vrot.slane %v1063_v8, 4  ;;  %1510 = vmatpush1.bf16.msra.mxu0 %v1962_v51 }
 0x114   : > { %1072 = vrot.lane.b32.xlu1 %v2692_v41, %s2090_s13  ;;  %1160 = vrot.lane.b32.xlu0 %v1150_v53, %s2091_s15  ;;  %v837_v20 = vadd.f32 %v2608_v47, %v1746_v35  ;;  %v1216_v56 = vshrl.u32 %v2573_v3, 16  ;;  %v1776_v61 = vcombine.high %v2571_v21, %v2571_v21  ;;  %v829_v62 = vadd.f32 %v1746_v35, %v828_v9  ;;  %v1963_v3 = vld [vmem:[%s2913_s9 + $0x8] sm:$0xff]  }
 0x115   : > { %v730_v57 = vadd.f32 %v729_v37, %v728_v52  ;;  %v2714_v17 = vsel %vm2545_vm15, %v1064_v42, %v2694_v48  ;;  %v840_v45 = vadd.f32 %v1857_v26, %v1746_v35  ;;  %vm2722_vm1 = vcmp.ne.s16.totalorder %v1781_v60, 0  ;;  %1511 = vmatprep.subr.bf16.mxu0 %v2084_v5 }
 0x116   : > { %v845_v27 = vmax.f32 %v837_v20, 0.0  ;;  %v1269_v21 = vsel %vm2597_vm5, %v1792_v38, %v2584_v11  ;;  %v1154_v63 = vrot.slane %v2621_v50, 4  ;;  %v832_v25 = vadd.f32 %v1746_v35, %v831_v55 }
 0x117   : > { %vm2733_vm0 = vcmp.ne.s16.totalorder %v1761_v15, 0  ;;  %v843_v9 = vmax.f32 %v829_v62, 0.0  ;;  %v846_v12 = vmax.f32 %v840_v45, 0.0  ;;  %vm864_vm7 = vcmask 1041408   ;;  %1512 = vmatpush1.bf16.msra.mxu0 %v1963_v3 }
 0x118   : > { %1340 = vrot.lane.b32.xlu1 %v2714_v17, %s2088_s0  ;;  %1279 = vrot.lane.b32.xlu0 %v1269_v21, %s2089_s14  ;;  %v1218_v10 = vrot.slane %v1216_v56, 4  ;;  %v2738_v0 = vrot.slane %v1776_v61, 5  ;;  %v844_v1 = vmax.f32 %v832_v25, 0.0  ;;  %v866_v11 = vsel %vm864_vm7, %v849_v2, 0 }
 0x119   : > { %1865 = vmatprep.subr.msk.bf16.mxu1 %vm864_vm7, %v849_v2  ;;  %v731_v14 = vrot.slane %v730_v57, 4  ;;  %v1185_v50 = vsel %vm2722_vm1, %v2537_v54, 0  ;;  %v848_v19 = vpack.c.bf16 %v846_v12, %v845_v27  ;;  %v990_v39 = vsel %vm2733_vm0, %v2439_v58, 0  ;;  %1513 = vmatprep.subr.bf16.mxu0 %v2084_v5 }
 0x11a   : > { %1859 = vmatpush3.bf16.msra.mxu1 %v866_v11  ;;  %v1156_v40 = vsel %vm2597_vm5, %v1154_v63, %v2738_v0  ;;  %v847_v49 = vpack.c.bf16 %v844_v1, %v843_v9  ;;  %v1764_v36 = vcombine.low %v990_v39, %v990_v39  ;;  %vm857_vm10 = vcmask 31744  }
 0x11b   : > { %v1829_v58 = vpack.c.bf16 %v2502_v34, %v2502_v34  ;;  %v989_v31 = vsel %vm2458_vm3, %v2492_v30, 0  ;;  %vm1249_vm13 = vcmp.ne.s16.totalorder %v1245_v43, 0  ;;  %v1785_v46 = vcombine.low %v1185_v50, %v1185_v50  ;;  %1514 = vmatpush1.bf16.msra.mxu0 %v1964_v32 }
 0x11c   : > { %1076 = vrot.lane.b32.xlu1 %v2714_v17, %s2090_s13  ;;  %1164 = vrot.lane.b32.xlu0 %v1156_v40, %s2091_s15  ;;  %1008 = vst.msk [vmem:[#allocation2 + $0x10] sm:$0xf] %vm1005_vm4, %v1764_v36  ;;  %v1762_v6 = vcombine.low %v989_v31, %v989_v31  ;;  %v1763_v16 = vcombine.high %v989_v31, %v989_v31  ;;  %v1297_v13 = vsel %vm2733_vm0, %v2537_v54, 0  ;;  %v1130_v24 = vsel %vm2454_vm2, %v2537_v54, 0 }
 0x11d   : > { %1860 = vmatprep.mubr.msk.bf16.mxu1 %vm857_vm10, %v847_v49  ;;  %v1219_v34 = vor.u32 %v1218_v10, %v2694_v48  ;;  %v1765_v22 = vcombine.high %v990_v39, %v990_v39  ;;  %v732_v18 = vadd.f32 %v731_v14, %v730_v57  ;;  %v1252_v43 = vsel %vm1249_vm13, %v2537_v54, 0  ;;  %1529 = vmatprep.subr.bf16.mxu0 %v2084_v5 }
 0x11e   : > { %1861 = vmatmul.mubr.msk.bf16.vlgmr.msra.gmra.mxu1 %vm857_vm10, %v848_v19  ;;  %1006 = vst.msk [vmem:[#allocation2] sm:$0xf] %vm1005_vm4, %v1762_v6  ;;  %1007 = vst.msk [vmem:[#allocation2 + $0x8] sm:$0xf] %vm1005_vm4, %v1763_v16  ;;  %v1222_v30 = vshll.u32 %v1829_v58, 16  ;;  %v1328_v26 = vshrl.u32 %v1829_v58, 16  ;;  %v1796_v28 = vcombine.high %v1297_v13, %v1297_v13  ;;  %v1777_v29 = vcombine.low %v1130_v24, %v1130_v24 }
 0x11f   : > { %1009 = vst.msk [vmem:[#allocation2 + $0x18] sm:$0xf] %vm1005_vm4, %v1765_v22  ;;  %v733_v8 = vrot.slane %v732_v18, 2  ;;  %v1220_v54 = vrot.slane %v1219_v34, 4  ;;  %v1790_v35 = vcombine.low %v1252_v43, %v1252_v43  ;;  %1530 = vmatpush2.bf16.msra.mxu0 %v1965_v7  ;;  %v1795_v51 = vcombine.low %v1297_v13, %v1297_v13  ;;  %v1969_v22 = vld [vmem:[#allocation2 + $0x14] ss:$8 sps:$4 sm:$0xff]  }
 0x120   : > { %1203 = vrot.lane.b32.xlu1 %v1785_v46, %s2086_s30  ;;  %1226 = vrot.lane.b32.xlu0 %v2692_v41, %s2087_s26  ;;  %v1224_v5 = vrot.slane %v1222_v30, 5  ;;  %v1330_v48 = vrot.slane %v1328_v26, 4  ;;  %vm737_vm2 = vcmask 122880   ;;  %v1158_v52 = vrot.slane %v1777_v29, 5  ;;  %v1968_v46 = vld [vmem:[#allocation2 + $0x4] ss:$8 sps:$4 sm:$0xff]  }
 0x121   : > { %v734_v37 = vadd.f32 %v733_v8, %v732_v18  ;;  %v1274_v53 = vrot.slane %v1790_v35, 5  ;;  %v1157_v15 = vrot.slane %v2738_v0, 4  ;;  %v1791_v42 = vcombine.high %v1252_v43, %v1252_v43  ;;  %1818 = vmatprep.mubr.msk.bf16.mxu0 %vm723_vm11, %v1968_v46 }
 0x122   : > { %v1225_v60 = vsel %vm2545_vm15, %v1220_v54, %v1224_v5  ;;  %v1273_v20 = vrot.slane %v2604_v33, 4  ;;  %v1334_v55 = vshll.u32 %v2494_v4, 16  ;;  %v1331_v61 = vor.u32 %v1330_v48, %v1224_v5 }
 0x123   : > { %v735_v41 = vrot.slane %v734_v37, 1  ;;  %v1159_v56 = vsel %vm2597_vm5, %v1157_v15, %v1158_v52  ;;  %v1276_v57 = vrot.slane %v1274_v53, 4  ;;  %v1277_v27 = vrot.slane %v1791_v42, 5 }
 0x124   : > { %1314 = vrot.lane.b32.xlu1 %v1796_v28, %s2981_s5  ;;  %1230 = vrot.lane.b32.xlu0 %v2714_v17, %s2087_s26  ;;  %v1275_v17 = vsel %vm2597_vm5, %v1273_v20, %v1274_v53  ;;  %v1332_v45 = vrot.slane %v1331_v61, 4  ;;  %v1336_v33 = vrot.slane %v1334_v55, 5  ;;  %vm1082_vm3 = vcmask 257152  }
 0x125   : > { %v736_v38 = vadd.f32 %v735_v41, %v734_v37  ;;  %v1278_v62 = vsel %vm2597_vm5, %v1276_v57, %v1277_v27  ;;  %vm1172_vm14 = vcmask 388352   ;;  %vm1209_vm12 = vcmask 519552  }
 0x126   : > { %v1337_v4 = vsel %vm2545_vm15, %v1332_v45, %v1336_v33  ;;  %vm1238_vm15 = vcmask 650752   ;;  %vm1291_vm4 = vcmask 781952   ;;  %vm1320_vm6 = vcmask 913152  }
 0x127   : > { %738 = vst.msk [vmem:[%s2793_s27] sm:$0x1] %vm737_vm2, %v736_v38  ;;  %vm1350_vm8 = vcmask 1044352  }
 0x128   : > { %1232 = vrot.lane.b32.xlu1 %v1225_v60, %s2087_s26  ;;  %1312 = vrot.lane.b32.xlu0 %v1795_v51, %s2981_s5  ;;  %s1820_s26 = sshll.u32 %s2070_s25, 1  ;;  %s1570_s5 = scalar_lea.sflag [#allocation4], %s467_s3 }
 0x12c   : > { %1166 = vrot.lane.b32.xlu1 %v1159_v56, %s2091_s15  ;;  %1283 = vrot.lane.b32.xlu0 %v1275_v17, %s2089_s14 }
 0x130   : > { %1285 = vrot.lane.b32.xlu1 %v1278_v62, %s2089_s14  ;;  %1342 = vrot.lane.b32.xlu0 %v1225_v60, %s2088_s0  ;;  %s1587_s14 = sshll.u32 %s2793_s27, 4  ;;  %s1588_s14 = int_to_ptr.vmem [resolvable:$true] %s1587_s14 }
 0x131   : > { %s1990_s1 = scalar_lea.vmem %s1588_s14, 16  ;;  %p1997_p4 = scmp.lt.s32.totalorder %s1588_s14, %s1995_s4 }
 0x132   : > { %p1991_p0 = scmp.ne.s32.totalorder %s1588_s14, %s1990_s1  ;;  %p1998_p5 = scmp.lt.s32.totalorder %s1996_s6, %s1990_s1 }
 0x134   : > { %1344 = vrot.lane.b32.xlu1 %v1337_v4, %s2088_s0  ;;  %s1583_s0 = sadd.s32 %s2066_s24, %s1820_s26  ;;  %p1992_p1 = pnand %p1991_p0, %p2209_p3 }
 0x135   : > { %s1821_s15 = sshll.u32 %s1583_s0, 4  ;;  %p1999_p6 = por %p1998_p5, %p1997_p4 }
 0x136   : > { %s1585_s13 = scalar_lea.hbm %s2916_s12, %s1821_s15  ;;  %p1993_p2 = pneg %p1992_p1 }
 0x138   : > { %p2000_p7 = pnand %p1999_p6, %p1993_p2 }
 0x16e   : > { %v1309_v2 = vpop.permute.xlu0 %1308 }
 0x171   : > { %v1200_v3 = vpop.permute.xlu1 %1199 }
 0x172   : > { %v1202_v47 = vpop.permute.xlu0 %1201 }
 0x175   : > { %v1311_v21 = vpop.permute.xlu1 %1310 }
 0x176   : > { %v1198_v63 = vpop.permute.xlu0 %1197 }
 0x179   : > { %v1229_v25 = vpop.permute.xlu1 %1228 }
 0x17a   : > { %v1339_v44 = vpop.permute.xlu0 %1338 }
 0x17d   : > { %v1282_v23 = vpop.permute.xlu1 %1281 }
 0x17e   : > { %v1075_v9 = vpop.permute.xlu0 %1074 }
 0x17f   : > { %1085 = vst.msk [vmem:[#allocation2 + $0x10] sm:$0xf] %vm1082_vm3, %v1075_v9 }
 0x182   : > { %v1163_v12 = vpop.permute.xlu1 %1162  ;;  %v1071_v10 = vpop.permute.xlu0 %1070 }
 0x183   : > { %1083 = vst.msk [vmem:[#allocation2] sm:$0xf] %vm1082_vm3, %v1071_v10 }
 0x186   : > { %v1073_v59 = vpop.permute.xlu1 %1072  ;;  %v1161_v0 = vpop.permute.xlu0 %1160 }
 0x187   : > { %1084 = vst.msk [vmem:[#allocation2 + $0x8] sm:$0xf] %vm1082_vm3, %v1073_v59 }
 0x188   : > { %1174 = vst.msk [vmem:[#allocation2 + $0x8] sm:$0xf] %vm1172_vm14, %v1163_v12  ;;  %1173 = vst.msk [vmem:[#allocation2] sm:$0xf] %vm1172_vm14, %v1161_v0 }
 0x189   : > { %1211 = vst.msk [vmem:[#allocation2 + $0x8] sm:$0xf] %vm1209_vm12, %v1200_v3  ;;  %1210 = vst.msk [vmem:[#allocation2] sm:$0xf] %vm1209_vm12, %v1198_v63 }
 0x18a   : > { %v1341_v1 = vpop.permute.xlu1 %1340  ;;  %1240 = vst.msk [vmem:[#allocation2 + $0x8] sm:$0xf] %vm1238_vm15, %v1229_v25  ;;  %v1280_v11 = vpop.permute.xlu0 %1279 }
 0x18b   : > { %1293 = vst.msk [vmem:[#allocation2 + $0x8] sm:$0xf] %vm1291_vm4, %v1282_v23 }
 0x18c   : > { %1322 = vst.msk [vmem:[#allocation2 + $0x8] sm:$0xf] %vm1320_vm6, %v1311_v21 }
 0x18d   : > { %1352 = vst.msk [vmem:[#allocation2 + $0x8] sm:$0xf] %vm1350_vm8, %v1341_v1 }
 0x18e   : > { %v1077_v14 = vpop.permute.xlu1 %1076  ;;  %v1165_v50 = vpop.permute.xlu0 %1164 }
 0x18f   : > { %1086 = vst.msk [vmem:[#allocation2 + $0x18] sm:$0xf] %vm1082_vm3, %v1077_v14 }
 0x190   : > { %1175 = vst.msk [vmem:[#allocation2 + $0x10] sm:$0xf] %vm1172_vm14, %v1165_v50 }
 0x191   : > { %1212 = vst.msk [vmem:[#allocation2 + $0x10] sm:$0xf] %vm1209_vm12, %v1202_v47 }
 0x192   : > { %v1204_v19 = vpop.permute.xlu1 %1203  ;;  %v1227_v39 = vpop.permute.xlu0 %1226 }
 0x193   : > { %1239 = vst.msk [vmem:[#allocation2] sm:$0xf] %vm1238_vm15, %v1227_v39 }
 0x194   : > { %1292 = vst.msk [vmem:[#allocation2] sm:$0xf] %vm1291_vm4, %v1280_v11 }
 0x195   : > { %1321 = vst.msk [vmem:[#allocation2] sm:$0xf] %vm1320_vm6, %v1309_v2 }
 0x196   : > { %v1315_v32 = vpop.permute.xlu1 %1314  ;;  %1351 = vst.msk [vmem:[#allocation2] sm:$0xf] %vm1350_vm8, %v1339_v44  ;;  %v1231_v40 = vpop.permute.xlu0 %1230 }
 0x197   : > { %1241 = vst.msk [vmem:[#allocation2 + $0x10] sm:$0xf] %vm1238_vm15, %v1231_v40 }
 0x19a   : > { %v1233_v49 = vpop.permute.xlu1 %1232  ;;  %v1313_v36 = vpop.permute.xlu0 %1312 }
 0x19d   : > { %v1966_v31 = vld [vmem:[#allocation2] ss:$8 sps:$4 sm:$0xff]  }
 0x19e   : > { %v1167_v58 = vpop.permute.xlu1 %1166  ;;  %v1284_v6 = vpop.permute.xlu0 %1283  ;;  %1532 = vmatmul.mubr.bf16.vlgmr.msra.gmra.mxu0 %v1966_v31 }
 0x19f   : > { %1176 = vst.msk [vmem:[#allocation2 + $0x18] sm:$0xf] %vm1172_vm14, %v1167_v58  ;;  %1819 = vmatprep.mubr.msk.bf16.mxu0 %vm723_vm11, %v1969_v22 }
 0x1a0   : > { %1213 = vst.msk [vmem:[#allocation2 + $0x18] sm:$0xf] %vm1209_vm12, %v1204_v19 }
 0x1a1   : > { %1294 = vst.msk [vmem:[#allocation2 + $0x10] sm:$0xf] %vm1291_vm4, %v1284_v6 }
 0x1a2   : > { %1242 = vst.msk [vmem:[#allocation2 + $0x18] sm:$0xf] %vm1238_vm15, %v1233_v49  ;;  %v1286_v16 = vpop.permute.xlu1 %1285  ;;  %v1343_v13 = vpop.permute.xlu0 %1342 }
 0x1a3   : > { %1323 = vst.msk [vmem:[#allocation2 + $0x10] sm:$0xf] %vm1320_vm6, %v1313_v36 }
 0x1a4   : > { %1295 = vst.msk [vmem:[#allocation2 + $0x18] sm:$0xf] %vm1291_vm4, %v1286_v16 }
 0x1a5   : > { %1324 = vst.msk [vmem:[#allocation2 + $0x18] sm:$0xf] %vm1320_vm6, %v1315_v32 }
 0x1a6   : > { %1353 = vst.msk [vmem:[#allocation2 + $0x10] sm:$0xf] %vm1350_vm8, %v1343_v13  ;;  %v1345_v34 = vpop.permute.xlu1 %1344 }
 0x1a7   : > { %1354 = vst.msk [vmem:[#allocation2 + $0x18] sm:$0xf] %vm1350_vm8, %v1345_v34 }
 0x1ae   : > { %v1971_v18 = vld [vmem:[#allocation2 + $0x10] ss:$8 sps:$4 sm:$0xff]  }
 0x1af   : > { %1540 = vmatmul.mubr.bf16.gmra.mxu0 %v1971_v18 }
 0x1b0   : > { %2003 = shalt.err (!%p2000_p7)
}
 0x1b1   : > { %s2004_s24 = scalar_lea.hbm %s1585_s13, 16  ;;  %s2008_s27 = scalar_lea.hbm %s2916_s12, 64 }
 0x1b2   : > { %p2005_p9 = scmp.ne.s32.totalorder %s1585_s13, %s2004_s24  ;;  %p2009_p12 = scmp.lt.s32.totalorder %s1585_s13, %s2916_s12 }
 0x1b3   : > { %p2010_p13 = scmp.lt.s32.totalorder %s2008_s27, %s2004_s24 }
 0x1b4   : > { %p2006_p10 = pnand %p2005_p9, %p2209_p3 }
 0x1b5   : > { %p2011_p0 = por %p2010_p13, %p2009_p12 }
 0x1b6   : > { %p2007_p11 = pneg %p2006_p10 }
 0x1b8   : > { %p2012_p1 = pnand %p2011_p0, %p2007_p11 }
 0x1ba   : > { %2015 = shalt.err (!%p2012_p1)
}
 0x1bb   : > { %1868 = dma.vmem_to_hbm [thread:$0]  (%p2209_p3), %s1588_s14, 16, %s1585_s13, %s1570_s5   ;;  %v1753_v30 = vld [vmem:[%s2912_s8] ss:$0 sm:$0xff] }
 0x1bc   : > { %s1733_s4 = sshll.u32 %s2253_s18, 2  ;;  %s1734_s6 = sshll.u32 %s2244_s20, 3  ;;  %v1804_v53 = vld [vmem:[%s2914_s10] ss:$0 sm:$0xff] }
 0x1bd   : > { %s493_s16 = sadd.s32 %s1734_s6, %s1733_s4 }
 0x1be   : > { %s1735_s19 = sshll.u32 %s493_s16, 3 }
 0x1bf   : > { %s495_s5 = scalar_lea.vmem %s2915_s11, %s1735_s19 }
 0x1de   : > { %v1862_v24 = vpop.f32.mrf.mxu1 }
 0x1df   : > { %v911_v35 = vadd.f32 %v1862_v24, %v1753_v30 }
 0x1e0   : > { %v902_v43 = vpop.f32.mrf.mxu1 }
 0x1e1   : > { %v903_v8 = vadd.f32 %v1753_v30, %v902_v43  ;;  %v1758_v5 = vmul.f32 -1.442695, %v911_v35 }
 0x1e2   : > { %v1863_v7 = vpop.f32.mrf.mxu1 }
 0x1e3   : > { %v1756_v28 = vmul.f32 -1.442695, %v903_v8  ;;  %v914_v41 = vadd.f32 %v1863_v7, %v1753_v30 }
 0x1e4   : > { %v905_v26 = vpop.f32.mrf.mxu1 }
 0x1e5   : > { %v906_v54 = vadd.f32 %v1753_v30, %v905_v26  ;;  %1974 = vpow2.f32 %v1756_v28  ;;  %v1759_v60 = vmul.f32 -1.442695, %v914_v41 }
 0x1e7   : > { %v1757_v29 = vmul.f32 -1.442695, %v906_v54 }
 0x1e9   : > { %1976 = vpow2.f32 %v1757_v29 }
 0x1ea   : > { %1978 = vpow2.f32 %v1758_v5 }
 0x1f2   : > { %v1975_v37 = vpop.eup %1974 }
 0x1f3   : > { %v929_v48 = vadd.f32 1.0, %v1975_v37 }
 0x1f5   : > { %1980 = vrcp.f32 %v929_v48 }
 0x1f6   : > { %v1977_v51 = vpop.eup %1976  ;;  %1982 = vpow2.f32 %v1759_v60 }
 0x1f7   : > { %v930_v52 = vadd.f32 1.0, %v1977_v51  ;;  %v1979_v38 = vpop.eup %1978 }
 0x1f8   : > { %v931_v56 = vadd.f32 1.0, %v1979_v38 }
 0x1f9   : > { %1984 = vrcp.f32 %v930_v52 }
 0x1fa   : > { %1986 = vrcp.f32 %v931_v56 }
 0x202   : > { %v1981_v20 = vpop.eup %1980 }
 0x203   : > { %v1983_v61 = vpop.eup %1982 }
 0x204   : > { %v932_v4 = vadd.f32 1.0, %v1983_v61 }
 0x206   : > { %v1985_v45 = vpop.eup %1984  ;;  %1988 = vrcp.f32 %v932_v4 }
 0x207   : > { %v1987_v44 = vpop.eup %1986 }
 0x213   : > { %v1989_v0 = vpop.eup %1988 }
 0x25e   : > { %v1533_v15 = vpop.f32.mrf.mxu0 }
 0x25f   : > { %v1534_v42 = vadd.f32 %v1804_v53, %v1533_v15 }
 0x260   : > { %v1535_v55 = vpop.f32.mrf.mxu0 }
 0x261   : > { %v1548_v57 = vmax.f32 %v1534_v42, 0.0 }
 0x262   : > { %v1536_v17 = vpop.f32.mrf.mxu0 }
 0x263   : > { %v1552_v27 = vmul.f32 %v1981_v20, %v1548_v57  ;;  %v1537_v62 = vadd.f32 %v1804_v53, %v1536_v17 }
 0x264   : > { %v1538_v33 = vpop.f32.mrf.mxu0 }
 0x265   : > { %1556 = vst.msk [vmem:[%s495_s5] sm:$0xff] %vm723_vm11, %v1552_v27  ;;  %v1549_v2 = vmax.f32 %v1537_v62, 0.0 }
 0x267   : > { %v1553_v3 = vmul.f32 %v1985_v45, %v1549_v2 }
 0x269   : > { %1557 = vst.msk [vmem:[%s495_s5 + $0x8] sm:$0xff] %vm723_vm11, %v1553_v3 }
 0x26f   : > { %v1541_v47 = vpop.f32.mrf.mxu0 }
 0x270   : > { %v1542_v21 = vadd.f32 %v1804_v53, %v1541_v47 }
 0x271   : > { %v1543_v63 = vpop.f32.mrf.mxu0 }
 0x272   : > { %v1550_v25 = vmax.f32 %v1542_v21, 0.0 }
 0x273   : > { %v1544_v23 = vpop.f32.mrf.mxu0 }
 0x274   : > { %v1554_v9 = vmul.f32 %v1987_v44, %v1550_v25  ;;  %v1545_v12 = vadd.f32 %v1804_v53, %v1544_v23 }
 0x275   : > { %v1546_v10 = vpop.f32.mrf.mxu0 }
 0x276   : > { %1558 = vst.msk [vmem:[%s495_s5 + $0x10] sm:$0xff] %vm723_vm11, %v1554_v9  ;;  %v1551_v59 = vmax.f32 %v1545_v12, 0.0 }
 0x278   : > { %v1555_v1 = vmul.f32 %v1989_v0, %v1551_v59 }
 0x27a   : > { %1559 = vst.msk [vmem:[%s495_s5 + $0x18] sm:$0xff] %vm723_vm11, %v1555_v1 }
 0x27b PF: > { %p1874_p3 = scmp.ge.s32.totalorder %s2082_s28, 2  ;;  %s1611_s20 = sand.u32 1, %s2054_s21  }
 0x27c   : > { %s1612_s18 = scalar_lea.sflag [#allocation4], %s1611_s20 }
 0x27d   : > { %p1871_p2 = pnand %p1874_p3, %p2218_p8 }
 0x27f   : > { %p1872_p4 = pneg %p1871_p2 }
 0x281   : > { %2049 = dma.done.wait (%p1872_p4), %s1612_s18, 16  }
 0x282   : > { %2051 = vsyncadd (%p1872_p4), %s1612_s18, 4294967280  ;;  %s26_s28 = sadd.s32 1, %s2082_s28   ;;  %s2982_s24 = sld [smem:[#allocation6_spill]] }
 0x283   : > { %p23_p5 = scmp.ge.s32.totalorder %s26_s28, 6   ;;  %s2983_s25 = sld [smem:[#allocation7_spill]] }
 0x284   : > { %s2984_s26 = sld [smem:[#allocation8_spill]]  ;;  %s2986_s21 = smov %s2058_s22 }
 0x285   : > { %s2985_s27 = sld [smem:[#allocation9_spill]]  ;;  %s2987_s22 = smov %s2062_s23 }
 0x286   : > { %s2988_s23 = smov %s2227_s29  ;;  %25 = sbr.rel (!%p23_p5) target bundleno = 13 (0xd), region = 114 }
 0x28b   :  { %1616 = vsyncpa [#allocation4], 1 }
 0x28c   :  { %1618 = vsyncpa [#allocation4 + $0x1], 1 }

</bundles_post_ra>
